<compile_context>
chip_gen: v7x
topology: tpu7x:2x2x1
jax: 0.10.0
libtpu: 0.0.40
codegen_flags: <defaults>
</compile_context>

<pallas_src>
import functools
import math

import jax
import jax.numpy as jnp
from jax.experimental import pallas as pl
from jax.experimental.pallas import tpu as pltpu


def _layer_norm(x, gamma, beta, eps=1e-12):
    mean = jnp.mean(x, axis=-1, keepdims=True)
    var = jnp.mean(jnp.square(x - mean), axis=-1, keepdims=True)
    return (x - mean) * jax.lax.rsqrt(var + eps) * gamma + beta


def _gelu(x):
    # TODO(synk): torch BERT uses the exact erf-based GELU; the tanh
    # approximation is used since erf is not reliably lowerable in Mosaic.
    c = math.sqrt(2.0 / math.pi)
    return 0.5 * x * (1.0 + jnp.tanh(c * (x + 0.044715 * x * x * x)))


def fused_cross_encoder_kernel(
        s1_ref, s2_ref, mask_ref,
        wq_ref, bq_ref, wk_ref, bk_ref, wv_ref, bv_ref,
        wo_ref, bo_ref, g1_ref, be1_ref,
        wi_ref, bi_ref, w2_ref, b2_ref, g2_ref, be2_ref,
        out_ref,
        s1_scr, k_scr, v_scr,
        *, num_heads, compute_dtype):
    layer = pl.program_id(1)
    f32 = jnp.float32
    cdt = compute_dtype

    S1, H = s1_ref.shape[1], s1_ref.shape[2]
    S2 = s2_ref.shape[1]
    NH = num_heads
    dh = H // NH
    scale = 1.0 / math.sqrt(dh)

    # ---- per-batch-element init: load s1, compute K/V once (weights are shared
    #      across layers and s2 is layer-invariant) -------------------------------
    @pl.when(layer == 0)
    def _init():
        s1_scr[...] = s1_ref[0].astype(f32)
        s2c = s2_ref[0].astype(cdt)                            # (S2, H)
        s2b = jnp.broadcast_to(s2c, (NH, S2, H))               # heads-batched view
        k = jnp.einsum('hsd,hde->hse', s2b, wk_ref[...],
                       preferred_element_type=f32) + bk_ref[...]
        v = jnp.einsum('hsd,hde->hse', s2b, wv_ref[...],
                       preferred_element_type=f32) + bv_ref[...]
        k_scr[...] = k.astype(cdt)
        v_scr[...] = v.astype(cdt)

    # ---- BertCoAttention: batched-head attention (no per-head unroll) ----------
    x = s1_scr[...]                                            # (S1, H) f32 carry
    xb = jnp.broadcast_to(x.astype(cdt), (NH, S1, H))

    q = jnp.einsum('hsd,hde->hse', xb, wq_ref[...],
                   preferred_element_type=f32) + bq_ref[...]   # (NH, S1, dh) f32
    q = (q * scale).astype(cdt)

    scores = jnp.einsum('hqd,hkd->hqk', q, k_scr[...],
                        preferred_element_type=f32)            # (NH, S1, S2) f32
    scores = scores + mask_ref[...]                            # (1,1,S2) broadcast, once
    scores = scores - jnp.max(scores, axis=-1, keepdims=True)
    e = jnp.exp(scores)
    probs = e * pl.reciprocal(jnp.sum(e, axis=-1, keepdims=True), approx=True)

    ctx = jnp.einsum('hqk,hkd->hqd', probs.astype(cdt), v_scr[...],
                     preferred_element_type=f32)               # (NH, S1, dh) f32

    # ---- BertSelfOutput: per-head output projection (batched) + residual + LN --
    part = jnp.einsum('hqd,hdk->hqk', ctx.astype(cdt), wo_ref[...],
                      preferred_element_type=f32)              # (NH, S1, H)
    attn = jnp.sum(part, axis=0) + bo_ref[...]
    attn = _layer_norm(attn + x, g1_ref[...], be1_ref[...])

    # ---- BertIntermediate (GELU) + BertOutput: dense + residual + LN -----------
    inter = _gelu(jnp.dot(attn.astype(cdt), wi_ref[...],
                          preferred_element_type=f32) + bi_ref[...])
    y = jnp.dot(inter.astype(cdt), w2_ref[...],
                preferred_element_type=f32) + b2_ref[...]
    y = _layer_norm(y + attn, g2_ref[...], be2_ref[...])

    # carry to next layer + emit this layer's encoded output.  When only the last
    # layer is requested, the out block index is layer-invariant so this is a
    # cheap VMEM overwrite; HBM writeback happens once per batch element.
    s1_scr[...] = y
    out_ref[0, 0] = y.astype(out_ref.dtype)


def bert_cross_encoder(s1, s2, mask, params, num_heads, layer_num,
                       output_all_encoded_layers=True,
                       compute_dtype=jnp.bfloat16):
    B, S1, H = s1.shape
    _, S2, _ = s2.shape
    NH = num_heads
    dh = H // NH
    I = params["wi"].shape[1]
    L = layer_num
    cdt = compute_dtype
    f32 = jnp.float32

    # Pre-split Q/K/V weights per head (one-time wrapper-side layout work) so the
    # kernel uses pure batched matmuls: (NH, H, dh) / (NH, 1, dh) / (NH, dh, H).
    def split_in(w):   # (H, H) -> (NH, H, dh)
        return jnp.transpose(w.reshape(H, NH, dh), (1, 0, 2)).astype(cdt)

    def split_b(b):    # (1, H) -> (NH, 1, dh)
        return b.reshape(NH, dh)[:, None, :].astype(f32)

    wq, bq = split_in(params["wq"]), split_b(params["bq"])
    wk, bk = split_in(params["wk"]), split_b(params["bk"])
    wv, bv = split_in(params["wv"]), split_b(params["bv"])
    wo = params["wo"].reshape(NH, dh, H).astype(cdt)
    wi = params["wi"].astype(cdt)
    w2 = params["w2"].astype(cdt)
    bo, g1, be1 = (params[k].astype(f32) for k in ("bo", "g1", "be1"))
    bi, b2 = params["bi"].astype(f32), params["b2"].astype(f32)
    g2, be2 = params["g2"].astype(f32), params["be2"].astype(f32)

    def fixed(shape):
        zeros = (0,) * len(shape)
        return pl.BlockSpec(shape, lambda b, l, _z=zeros: _z)

    in_specs = [
        pl.BlockSpec((1, S1, H), lambda b, l: (b, 0, 0)),   # s1 (layer-0 input)
        pl.BlockSpec((1, S2, H), lambda b, l: (b, 0, 0)),   # s2
        pl.BlockSpec((1, 1, S2), lambda b, l: (b, 0, 0)),   # additive mask
        fixed((NH, H, dh)), fixed((NH, 1, dh)),             # query
        fixed((NH, H, dh)), fixed((NH, 1, dh)),             # key
        fixed((NH, H, dh)), fixed((NH, 1, dh)),             # value
        fixed((NH, dh, H)), fixed((1, H)),                  # self-output dense
        fixed((1, H)), fixed((1, H)),                       # LayerNorm 1
        fixed((H, I)), fixed((1, I)),                       # intermediate dense
        fixed((I, H)), fixed((1, H)),                       # output dense
        fixed((1, H)), fixed((1, H)),                       # LayerNorm 2
    ]

    if output_all_encoded_layers:
        out_layers = L
        out_spec = pl.BlockSpec((1, 1, S1, H), lambda b, l: (l, b, 0, 0))
    else:
        # only the final layer leaves VMEM -> 1 HBM writeback per batch element
        out_layers = 1
        out_spec = pl.BlockSpec((1, 1, S1, H), lambda b, l: (0, b, 0, 0))

    kernel = functools.partial(fused_cross_encoder_kernel,
                               num_heads=NH, compute_dtype=cdt)

    out = pl.pallas_call(
        kernel,
        out_shape=jax.ShapeDtypeStruct((out_layers, B, S1, H), s1.dtype),
        grid_spec=pltpu.PrefetchScalarGridSpec(
            num_scalar_prefetch=0,
            grid=(B, L),                      # layer axis innermost & sequential
            in_specs=in_specs,
            out_specs=out_spec,
            scratch_shapes=[
                pltpu.VMEM((S1, H), f32),       # carried hidden state
                pltpu.VMEM((NH, S2, dh), cdt),  # cached K (layer-invariant)
                pltpu.VMEM((NH, S2, dh), cdt),  # cached V (layer-invariant)
            ]),
        compiler_params=pltpu.CompilerParams(
            dimension_semantics=("parallel", "arbitrary"),
            vmem_limit_bytes=48 * 1024 * 1024),   # > default scoped limit
    )(s1, s2, mask,
      wq, bq, wk, bk, wv, bv,
      wo, bo, g1, be1,
      wi, bi, w2, b2, g2, be2)

    return [out[i] for i in range(out_layers)]


# ---------------- pure-JAX reference (same math & dtype policy, no Pallas) -----
def _ref_layer(x, s2, mask, p, num_heads, compute_dtype):
    H = x.shape[-1]
    dh = H // num_heads
    B, S1, _ = x.shape
    S2 = s2.shape[1]
    f32 = jnp.float32
    c = lambda a: a.astype(compute_dtype)

    q = jnp.einsum("bsd,de->bse", c(x), c(p["wq"]), preferred_element_type=f32) + p["bq"]
    k = jnp.einsum("bsd,de->bse", c(s2), c(p["wk"]), preferred_element_type=f32) + p["bk"]
    v = jnp.einsum("bsd,de->bse", c(s2), c(p["wv"]), preferred_element_type=f32) + p["bv"]
    qh = q.reshape(B, S1, num_heads, dh).transpose(0, 2, 1, 3) * (1.0 / math.sqrt(dh))
    kh = k.reshape(B, S2, num_heads, dh).transpose(0, 2, 1, 3)
    vh = v.reshape(B, S2, num_heads, dh).transpose(0, 2, 1, 3)
    sc = jnp.einsum("bhqd,bhkd->bhqk", c(qh), c(kh), preferred_element_type=f32)
    sc = sc + mask[:, None, :, :]
    probs = jax.nn.softmax(sc, axis=-1)
    ctx = jnp.einsum("bhqk,bhkd->bhqd", c(probs), c(vh), preferred_element_type=f32)
    ctx = ctx.transpose(0, 2, 1, 3).reshape(B, S1, H)
    attn = jnp.einsum("bsd,de->bse", c(ctx), c(p["wo"]), preferred_element_type=f32) + p["bo"]
    attn = _layer_norm(attn + x, p["g1"], p["be1"])
    inter = _gelu(jnp.einsum("bsd,de->bse", c(attn), c(p["wi"]),
                             preferred_element_type=f32) + p["bi"])
    y = jnp.einsum("bsd,de->bse", c(inter), c(p["w2"]), preferred_element_type=f32) + p["b2"]
    y = _layer_norm(y + attn, p["g2"], p["be2"])
    return y


if __name__ == "__main__":
    B, S1, S2, H, NH, I = 2, 8, 8, 32, 4, 64
    LAYERS = 2

    key = jax.random.PRNGKey(0)
    keys = jax.random.split(key, 12)

    def w(k, shape):
        return (0.02 * jax.random.normal(k, shape)).astype(jnp.float32)

    params = {
        "wq": w(keys[0], (H, H)), "bq": jnp.zeros((1, H), jnp.float32),
        "wk": w(keys[1], (H, H)), "bk": jnp.zeros((1, H), jnp.float32),
        "wv": w(keys[2], (H, H)), "bv": jnp.zeros((1, H), jnp.float32),
        "wo": w(keys[3], (H, H)), "bo": jnp.zeros((1, H), jnp.float32),
        "g1": jnp.ones((1, H), jnp.float32), "be1": jnp.zeros((1, H), jnp.float32),
        "wi": w(keys[4], (H, I)), "bi": jnp.zeros((1, I), jnp.float32),
        "w2": w(keys[5], (I, H)), "b2": jnp.zeros((1, H), jnp.float32),
        "g2": jnp.ones((1, H), jnp.float32), "be2": jnp.zeros((1, H), jnp.float32),
    }

    s1 = jax.random.normal(keys[6], (B, S1, H), jnp.float32)
    s2 = jax.random.normal(keys[7], (B, S2, H), jnp.float32)
    # additive attention mask: last two key positions of batch 1 are masked out
    mask = jnp.zeros((B, 1, S2), jnp.float32)
    mask = mask.at[1, 0, S2 - 2:].set(-10000.0)

    # all-layers path
    outs = bert_cross_encoder(s1, s2, mask, params, NH, LAYERS,
                              output_all_encoded_layers=True,
                              compute_dtype=jnp.bfloat16)
    outs = [jax.block_until_ready(o) for o in outs]

    # last-layer-only path (single HBM writeback per batch element)
    last_only = bert_cross_encoder(s1, s2, mask, params, NH, LAYERS,
                                   output_all_encoded_layers=False,
                                   compute_dtype=jnp.bfloat16)
    last_only = [jax.block_until_ready(o) for o in last_only]

    # sanity check against a pure-JAX reference with the same bf16-operand /
    # f32-accumulation policy (approx softmax reciprocal accounts for the slack)
    ref = s1
    for li, o in enumerate(outs):
        ref = _ref_layer(ref, s2, mask, params, NH, jnp.bfloat16)
        assert jnp.allclose(o, ref, atol=1e-2, rtol=1e-2), f"layer {li} mismatch"
    assert jnp.allclose(last_only[0], outs[-1], atol=1e-5, rtol=1e-5), \
        "last-only path disagrees with all-layers path"

    print("KERNEL_OK")
</pallas_src>

<mosaic_0001>
module attributes {stable_mosaic.version = 11 : i64} {
  func.func @fused_cross_encoder_kernel(%arg0: i32, %arg1: i32, %arg2: memref<1x8x32xf32, #tpu.memory_space<vmem>>, %arg3: memref<1x8x32xf32, #tpu.memory_space<vmem>>, %arg4: memref<1x1x8xf32, #tpu.memory_space<vmem>>, %arg5: memref<4x32x8xbf16, #tpu.memory_space<vmem>>, %arg6: memref<4x1x8xf32, #tpu.memory_space<vmem>>, %arg7: memref<4x32x8xbf16, #tpu.memory_space<vmem>>, %arg8: memref<4x1x8xf32, #tpu.memory_space<vmem>>, %arg9: memref<4x32x8xbf16, #tpu.memory_space<vmem>>, %arg10: memref<4x1x8xf32, #tpu.memory_space<vmem>>, %arg11: memref<4x8x32xbf16, #tpu.memory_space<vmem>>, %arg12: memref<1x32xf32, #tpu.memory_space<vmem>>, %arg13: memref<1x32xf32, #tpu.memory_space<vmem>>, %arg14: memref<1x32xf32, #tpu.memory_space<vmem>>, %arg15: memref<32x64xbf16, #tpu.memory_space<vmem>>, %arg16: memref<1x64xf32, #tpu.memory_space<vmem>>, %arg17: memref<64x32xbf16, #tpu.memory_space<vmem>>, %arg18: memref<1x32xf32, #tpu.memory_space<vmem>>, %arg19: memref<1x32xf32, #tpu.memory_space<vmem>>, %arg20: memref<1x32xf32, #tpu.memory_space<vmem>>, %arg21: memref<1x1x8x32xf32, #tpu.memory_space<vmem>>, %arg22: memref<8x32xf32, #tpu.memory_space<vmem>>, %arg23: memref<4x8x8xbf16, #tpu.memory_space<vmem>>, %arg24: memref<4x8x8xbf16, #tpu.memory_space<vmem>>) attributes {dimension_semantics = [#tpu.dimension_semantics<parallel>, #tpu.dimension_semantics<arbitrary>], iteration_bounds = array<i64: 2, 2>, scalar_prefetch = 0 : i64, scratch_operands = 3 : i64, tpu.core_type = #tpu.core_type<tc>, window_params = [{transform_indices = @transform_0, window_bounds = array<i64: 1, 8, 32>}, {transform_indices = @transform_1, window_bounds = array<i64: 1, 8, 32>}, {transform_indices = @transform_2, window_bounds = array<i64: 1, 1, 8>}, {pipeline_mode = #tpu.pipeline_mode<synchronous>, transform_indices = @transform_3, window_bounds = array<i64: 4, 32, 8>}, {pipeline_mode = #tpu.pipeline_mode<synchronous>, transform_indices = @transform_4, window_bounds = array<i64: 4, 1, 8>}, {pipeline_mode = #tpu.pipeline_mode<synchronous>, transform_indices = @transform_5, window_bounds = array<i64: 4, 32, 8>}, {pipeline_mode = #tpu.pipeline_mode<synchronous>, transform_indices = @transform_6, window_bounds = array<i64: 4, 1, 8>}, {pipeline_mode = #tpu.pipeline_mode<synchronous>, transform_indices = @transform_7, window_bounds = array<i64: 4, 32, 8>}, {pipeline_mode = #tpu.pipeline_mode<synchronous>, transform_indices = @transform_8, window_bounds = array<i64: 4, 1, 8>}, {pipeline_mode = #tpu.pipeline_mode<synchronous>, transform_indices = @transform_9, window_bounds = array<i64: 4, 8, 32>}, {pipeline_mode = #tpu.pipeline_mode<synchronous>, transform_indices = @transform_10, window_bounds = array<i64: 1, 32>}, {pipeline_mode = #tpu.pipeline_mode<synchronous>, transform_indices = @transform_11, window_bounds = array<i64: 1, 32>}, {pipeline_mode = #tpu.pipeline_mode<synchronous>, transform_indices = @transform_12, window_bounds = array<i64: 1, 32>}, {pipeline_mode = #tpu.pipeline_mode<synchronous>, transform_indices = @transform_13, window_bounds = array<i64: 32, 64>}, {pipeline_mode = #tpu.pipeline_mode<synchronous>, transform_indices = @transform_14, window_bounds = array<i64: 1, 64>}, {pipeline_mode = #tpu.pipeline_mode<synchronous>, transform_indices = @transform_15, window_bounds = array<i64: 64, 32>}, {pipeline_mode = #tpu.pipeline_mode<synchronous>, transform_indices = @transform_16, window_bounds = array<i64: 1, 32>}, {pipeline_mode = #tpu.pipeline_mode<synchronous>, transform_indices = @transform_17, window_bounds = array<i64: 1, 32>}, {pipeline_mode = #tpu.pipeline_mode<synchronous>, transform_indices = @transform_18, window_bounds = array<i64: 1, 32>}, {transform_indices = @transform_19, window_bounds = array<i64: 1, 1, 8, 32>}]} {
    %c0_i32 = arith.constant 0 : i32
    %0 = arith.cmpi eq, %arg1, %c0_i32 : i32
    %1 = arith.extui %0 : i1 to i32
    %c0_i32_0 = arith.constant 0 : i32
    %2 = arith.cmpi ne, %1, %c0_i32_0 : i32
    scf.if %2 {
      %c0_67 = arith.constant 0 : index
      %c0_68 = arith.constant 0 : index
      %c0_69 = arith.constant 0 : index
      %119 = vector.load %arg2[%c0_67, %c0_68, %c0_69] : memref<1x8x32xf32, #tpu.memory_space<vmem>>, vector<1x8x32xf32>
      %120 = vector.shape_cast %119 : vector<1x8x32xf32> to vector<8x32xf32>
      %c0_70 = arith.constant 0 : index
      %c0_71 = arith.constant 0 : index
      %121 = vector.load %arg22[%c0_70, %c0_71] : memref<8x32xf32, #tpu.memory_space<vmem>>, vector<8x32xf32>
      tpu.vector_store %arg22[%c0_70, %c0_71], %120 {strides = array<i32>} : memref<8x32xf32, #tpu.memory_space<vmem>>, vector<8x32xf32>,
      %c0_72 = arith.constant 0 : index
      %c0_73 = arith.constant 0 : index
      %c0_74 = arith.constant 0 : index
      %122 = vector.load %arg3[%c0_72, %c0_73, %c0_74] : memref<1x8x32xf32, #tpu.memory_space<vmem>>, vector<1x8x32xf32>
      %123 = vector.shape_cast %122 : vector<1x8x32xf32> to vector<8x32xf32>
      %124 = arith.truncf %123 : vector<8x32xf32> to vector<8x32xbf16>
      %125 = vector.shape_cast %124 : vector<8x32xbf16> to vector<1x8x32xbf16>
      %126 = vector.broadcast %125 : vector<1x8x32xbf16> to vector<4x8x32xbf16>
      %c0_75 = arith.constant 0 : index
      %c0_76 = arith.constant 0 : index
      %c0_77 = arith.constant 0 : index
      %127 = vector.load %arg7[%c0_75, %c0_76, %c0_77] : memref<4x32x8xbf16, #tpu.memory_space<vmem>>, vector<4x32x8xbf16>
      "tpu.trace_start"() <{level = 10 : i32, message = "hsd,hde->hse"}> : () -> ()
      %cst_78 = arith.constant dense<0.000000e+00> : vector<4x8x8xf32>
      %128 = tpu.matmul %126, %127, %cst_78 {dimension_numbers = #tpu.dot_dimension_numbers<[2], [1], [1], [2], [0, 0, 0, 1, 1, 2], [0], [0]>} : vector<4x8x32xbf16>, vector<4x32x8xbf16>, vector<4x8x8xf32> -> vector<4x8x8xf32>
      "tpu.trace_stop"() : () -> ()
      %c0_79 = arith.constant 0 : index
      %c0_80 = arith.constant 0 : index
      %c0_81 = arith.constant 0 : index
      %129 = vector.load %arg8[%c0_79, %c0_80, %c0_81] : memref<4x1x8xf32, #tpu.memory_space<vmem>>, vector<4x1x8xf32>
      %130 = vector.broadcast %129 : vector<4x1x8xf32> to vector<4x8x8xf32>
      %131 = arith.addf %128, %130 : vector<4x8x8xf32>
      %c0_82 = arith.constant 0 : index
      %c0_83 = arith.constant 0 : index
      %c0_84 = arith.constant 0 : index
      %132 = vector.load %arg9[%c0_82, %c0_83, %c0_84] : memref<4x32x8xbf16, #tpu.memory_space<vmem>>, vector<4x32x8xbf16>
      "tpu.trace_start"() <{level = 10 : i32, message = "hsd,hde->hse"}> : () -> ()
      %cst_85 = arith.constant dense<0.000000e+00> : vector<4x8x8xf32>
      %133 = tpu.matmul %126, %132, %cst_85 {dimension_numbers = #tpu.dot_dimension_numbers<[2], [1], [1], [2], [0, 0, 0, 1, 1, 2], [0], [0]>} : vector<4x8x32xbf16>, vector<4x32x8xbf16>, vector<4x8x8xf32> -> vector<4x8x8xf32>
      "tpu.trace_stop"() : () -> ()
      %c0_86 = arith.constant 0 : index
      %c0_87 = arith.constant 0 : index
      %c0_88 = arith.constant 0 : index
      %134 = vector.load %arg10[%c0_86, %c0_87, %c0_88] : memref<4x1x8xf32, #tpu.memory_space<vmem>>, vector<4x1x8xf32>
      %135 = vector.broadcast %134 : vector<4x1x8xf32> to vector<4x8x8xf32>
      %136 = arith.addf %133, %135 : vector<4x8x8xf32>
      %137 = arith.truncf %131 : vector<4x8x8xf32> to vector<4x8x8xbf16>
      %c0_89 = arith.constant 0 : index
      %c0_90 = arith.constant 0 : index
      %c0_91 = arith.constant 0 : index
      %138 = vector.load %arg23[%c0_89, %c0_90, %c0_91] : memref<4x8x8xbf16, #tpu.memory_space<vmem>>, vector<4x8x8xbf16>
      tpu.vector_store %arg23[%c0_89, %c0_90, %c0_91], %137 {strides = array<i32>} : memref<4x8x8xbf16, #tpu.memory_space<vmem>>, vector<4x8x8xbf16>,
      %139 = arith.truncf %136 : vector<4x8x8xf32> to vector<4x8x8xbf16>
      %c0_92 = arith.constant 0 : index
      %c0_93 = arith.constant 0 : index
      %c0_94 = arith.constant 0 : index
      %140 = vector.load %arg24[%c0_92, %c0_93, %c0_94] : memref<4x8x8xbf16, #tpu.memory_space<vmem>>, vector<4x8x8xbf16>
      tpu.vector_store %arg24[%c0_92, %c0_93, %c0_94], %139 {strides = array<i32>} : memref<4x8x8xbf16, #tpu.memory_space<vmem>>, vector<4x8x8xbf16>,
    } else {
    }
    %c0 = arith.constant 0 : index
    %c0_1 = arith.constant 0 : index
    %3 = vector.load %arg22[%c0, %c0_1] : memref<8x32xf32, #tpu.memory_space<vmem>>, vector<8x32xf32>
    %4 = arith.truncf %3 : vector<8x32xf32> to vector<8x32xbf16>
    %5 = vector.shape_cast %4 : vector<8x32xbf16> to vector<1x8x32xbf16>
    %6 = vector.broadcast %5 : vector<1x8x32xbf16> to vector<4x8x32xbf16>
    %c0_2 = arith.constant 0 : index
    %c0_3 = arith.constant 0 : index
    %c0_4 = arith.constant 0 : index
    %7 = vector.load %arg5[%c0_2, %c0_3, %c0_4] : memref<4x32x8xbf16, #tpu.memory_space<vmem>>, vector<4x32x8xbf16>
    "tpu.trace_start"() <{level = 10 : i32, message = "hsd,hde->hse"}> : () -> ()
    %cst = arith.constant dense<0.000000e+00> : vector<4x8x8xf32>
    %8 = tpu.matmul %6, %7, %cst {dimension_numbers = #tpu.dot_dimension_numbers<[2], [1], [1], [2], [0, 0, 0, 1, 1, 2], [0], [0]>} : vector<4x8x32xbf16>, vector<4x32x8xbf16>, vector<4x8x8xf32> -> vector<4x8x8xf32>
    "tpu.trace_stop"() : () -> ()
    %c0_5 = arith.constant 0 : index
    %c0_6 = arith.constant 0 : index
    %c0_7 = arith.constant 0 : index
    %9 = vector.load %arg6[%c0_5, %c0_6, %c0_7] : memref<4x1x8xf32, #tpu.memory_space<vmem>>, vector<4x1x8xf32>
    %10 = vector.broadcast %9 : vector<4x1x8xf32> to vector<4x8x8xf32>
    %11 = arith.addf %8, %10 : vector<4x8x8xf32>
    %cst_8 = arith.constant 0.353553385 : f32
    %12 = vector.broadcast %cst_8 : f32 to vector<4x8x8xf32>
    %13 = arith.mulf %11, %12 : vector<4x8x8xf32>
    %14 = arith.truncf %13 : vector<4x8x8xf32> to vector<4x8x8xbf16>
    %c0_9 = arith.constant 0 : index
    %c0_10 = arith.constant 0 : index
    %c0_11 = arith.constant 0 : index
    %15 = vector.load %arg23[%c0_9, %c0_10, %c0_11] : memref<4x8x8xbf16, #tpu.memory_space<vmem>>, vector<4x8x8xbf16>
    "tpu.trace_start"() <{level = 10 : i32, message = "hqd,hkd->hqk"}> : () -> ()
    %cst_12 = arith.constant dense<0.000000e+00> : vector<4x8x8xf32>
    %16 = tpu.matmul %14, %15, %cst_12 {dimension_numbers = #tpu.dot_dimension_numbers<[2], [2], [1], [1], [0, 0, 0, 1, 1, 1], [0], [0]>} : vector<4x8x8xbf16>, vector<4x8x8xbf16>, vector<4x8x8xf32> -> vector<4x8x8xf32>
    "tpu.trace_stop"() : () -> ()
    %c0_13 = arith.constant 0 : index
    %c0_14 = arith.constant 0 : index
    %c0_15 = arith.constant 0 : index
    %17 = vector.load %arg4[%c0_13, %c0_14, %c0_15] : memref<1x1x8xf32, #tpu.memory_space<vmem>>, vector<1x1x8xf32>
    %18 = vector.broadcast %17 : vector<1x1x8xf32> to vector<4x8x8xf32>
    %19 = arith.addf %16, %18 : vector<4x8x8xf32>
    %cst_16 = arith.constant dense<0xFF800000> : vector<4x8xf32>
    %20 = vector.multi_reduction <maximumf>, %19, %cst_16 [2] : vector<4x8x8xf32> to vector<4x8xf32>
    %21 = vector.shape_cast %20 : vector<4x8xf32> to vector<4x8x1xf32>
    %22 = vector.broadcast %21 : vector<4x8x1xf32> to vector<4x8x8xf32>
    %23 = arith.subf %19, %22 : vector<4x8x8xf32>
    %24 = math.exp %23 : vector<4x8x8xf32>
    %cst_17 = arith.constant dense<0.000000e+00> : vector<4x8xf32>
    %25 = vector.multi_reduction <add>, %24, %cst_17 [2] : vector<4x8x8xf32> to vector<4x8xf32>
    %26 = vector.shape_cast %25 : vector<4x8xf32> to vector<4x8x1xf32>
    %27 = tpu.reciprocal %26 {approx = true} : vector<4x8x1xf32> -> vector<4x8x1xf32>
    %28 = vector.broadcast %27 : vector<4x8x1xf32> to vector<4x8x8xf32>
    %29 = arith.mulf %24, %28 : vector<4x8x8xf32>
    %30 = arith.truncf %29 : vector<4x8x8xf32> to vector<4x8x8xbf16>
    %c0_18 = arith.constant 0 : index
    %c0_19 = arith.constant 0 : index
    %c0_20 = arith.constant 0 : index
    %31 = vector.load %arg24[%c0_18, %c0_19, %c0_20] : memref<4x8x8xbf16, #tpu.memory_space<vmem>>, vector<4x8x8xbf16>
    "tpu.trace_start"() <{level = 10 : i32, message = "hqk,hkd->hqd"}> : () -> ()
    %cst_21 = arith.constant dense<0.000000e+00> : vector<4x8x8xf32>
    %32 = tpu.matmul %30, %31, %cst_21 {dimension_numbers = #tpu.dot_dimension_numbers<[2], [1], [1], [2], [0, 0, 0, 1, 1, 2], [0], [0]>} : vector<4x8x8xbf16>, vector<4x8x8xbf16>, vector<4x8x8xf32> -> vector<4x8x8xf32>
    "tpu.trace_stop"() : () -> ()
    %33 = arith.truncf %32 : vector<4x8x8xf32> to vector<4x8x8xbf16>
    %c0_22 = arith.constant 0 : index
    %c0_23 = arith.constant 0 : index
    %c0_24 = arith.constant 0 : index
    %34 = vector.load %arg11[%c0_22, %c0_23, %c0_24] : memref<4x8x32xbf16, #tpu.memory_space<vmem>>, vector<4x8x32xbf16>
    "tpu.trace_start"() <{level = 10 : i32, message = "hqd,hdk->hqk"}> : () -> ()
    %cst_25 = arith.constant dense<0.000000e+00> : vector<4x8x32xf32>
    %35 = tpu.matmul %33, %34, %cst_25 {dimension_numbers = #tpu.dot_dimension_numbers<[2], [1], [1], [2], [0, 0, 0, 1, 1, 2], [0], [0]>} : vector<4x8x8xbf16>, vector<4x8x32xbf16>, vector<4x8x32xf32> -> vector<4x8x32xf32>
    "tpu.trace_stop"() : () -> ()
    %cst_26 = arith.constant dense<0.000000e+00> : vector<8x32xf32>
    %36 = vector.multi_reduction <add>, %35, %cst_26 [0] : vector<4x8x32xf32> to vector<8x32xf32>
    %c0_27 = arith.constant 0 : index
    %c0_28 = arith.constant 0 : index
    %37 = vector.load %arg12[%c0_27, %c0_28] : memref<1x32xf32, #tpu.memory_space<vmem>>, vector<1x32xf32>
    %38 = vector.broadcast %37 : vector<1x32xf32> to vector<8x32xf32>
    %39 = arith.addf %36, %38 : vector<8x32xf32>
    %40 = arith.addf %39, %3 : vector<8x32xf32>
    %c0_29 = arith.constant 0 : index
    %c0_30 = arith.constant 0 : index
    %41 = vector.load %arg13[%c0_29, %c0_30] : memref<1x32xf32, #tpu.memory_space<vmem>>, vector<1x32xf32>
    %c0_31 = arith.constant 0 : index
    %c0_32 = arith.constant 0 : index
    %42 = vector.load %arg14[%c0_31, %c0_32] : memref<1x32xf32, #tpu.memory_space<vmem>>, vector<1x32xf32>
    %cst_33 = arith.constant dense<0.000000e+00> : vector<8xf32>
    %43 = vector.multi_reduction <add>, %40, %cst_33 [1] : vector<8x32xf32> to vector<8xf32>
    %44 = vector.shape_cast %43 : vector<8xf32> to vector<8x1xf32>
    %cst_34 = arith.constant 3.200000e+01 : f32
    %45 = vector.broadcast %cst_34 : f32 to vector<8x1xf32>
    %46 = arith.divf %44, %45 : vector<8x1xf32>
    %47 = vector.broadcast %46 : vector<8x1xf32> to vector<8x32xf32>
    %48 = arith.subf %40, %47 : vector<8x32xf32>
    %49 = arith.mulf %48, %48 : vector<8x32xf32>
    %cst_35 = arith.constant dense<0.000000e+00> : vector<8xf32>
    %50 = vector.multi_reduction <add>, %49, %cst_35 [1] : vector<8x32xf32> to vector<8xf32>
    %51 = vector.shape_cast %50 : vector<8xf32> to vector<8x1xf32>
    %cst_36 = arith.constant 3.200000e+01 : f32
    %52 = vector.broadcast %cst_36 : f32 to vector<8x1xf32>
    %53 = arith.divf %51, %52 : vector<8x1xf32>
    %54 = vector.broadcast %46 : vector<8x1xf32> to vector<8x32xf32>
    %55 = arith.subf %40, %54 : vector<8x32xf32>
    %cst_37 = arith.constant 9.99999996E-13 : f32
    %56 = vector.broadcast %cst_37 : f32 to vector<8x1xf32>
    %57 = arith.addf %53, %56 : vector<8x1xf32>
    %58 = math.rsqrt %57 : vector<8x1xf32>
    %59 = vector.broadcast %58 : vector<8x1xf32> to vector<8x32xf32>
    %60 = arith.mulf %55, %59 : vector<8x32xf32>
    %61 = vector.broadcast %41 : vector<1x32xf32> to vector<8x32xf32>
    %62 = arith.mulf %60, %61 : vector<8x32xf32>
    %63 = vector.broadcast %42 : vector<1x32xf32> to vector<8x32xf32>
    %64 = arith.addf %62, %63 : vector<8x32xf32>
    %65 = arith.truncf %64 : vector<8x32xf32> to vector<8x32xbf16>
    %c0_38 = arith.constant 0 : index
    %c0_39 = arith.constant 0 : index
    %66 = vector.load %arg15[%c0_38, %c0_39] : memref<32x64xbf16, #tpu.memory_space<vmem>>, vector<32x64xbf16>
    %cst_40 = arith.constant dense<0.000000e+00> : vector<8x64xf32>
    %67 = tpu.matmul %65, %66, %cst_40 {dimension_numbers = #tpu.dot_dimension_numbers<[1], [0], [0], [1], [0, 0, 1, 1], [], []>} : vector<8x32xbf16>, vector<32x64xbf16>, vector<8x64xf32> -> vector<8x64xf32>
    %c0_41 = arith.constant 0 : index
    %c0_42 = arith.constant 0 : index
    %68 = vector.load %arg16[%c0_41, %c0_42] : memref<1x64xf32, #tpu.memory_space<vmem>>, vector<1x64xf32>
    %69 = vector.broadcast %68 : vector<1x64xf32> to vector<8x64xf32>
    %70 = arith.addf %67, %69 : vector<8x64xf32>
    %cst_43 = arith.constant 5.000000e-01 : f32
    %71 = vector.broadcast %cst_43 : f32 to vector<8x64xf32>
    %72 = arith.mulf %71, %70 : vector<8x64xf32>
    %cst_44 = arith.constant 4.471500e-02 : f32
    %73 = vector.broadcast %cst_44 : f32 to vector<8x64xf32>
    %74 = arith.mulf %73, %70 : vector<8x64xf32>
    %75 = arith.mulf %74, %70 : vector<8x64xf32>
    %76 = arith.mulf %75, %70 : vector<8x64xf32>
    %77 = arith.addf %70, %76 : vector<8x64xf32>
    %cst_45 = arith.constant 0.797884583 : f32
    %78 = vector.broadcast %cst_45 : f32 to vector<8x64xf32>
    %79 = arith.mulf %78, %77 : vector<8x64xf32>
    %80 = math.tanh %79 : vector<8x64xf32>
    %cst_46 = arith.constant 1.000000e+00 : f32
    %81 = vector.broadcast %cst_46 : f32 to vector<8x64xf32>
    %82 = arith.addf %81, %80 : vector<8x64xf32>
    %83 = arith.mulf %72, %82 : vector<8x64xf32>
    %84 = arith.truncf %83 : vector<8x64xf32> to vector<8x64xbf16>
    %c0_47 = arith.constant 0 : index
    %c0_48 = arith.constant 0 : index
    %85 = vector.load %arg17[%c0_47, %c0_48] : memref<64x32xbf16, #tpu.memory_space<vmem>>, vector<64x32xbf16>
    %cst_49 = arith.constant dense<0.000000e+00> : vector<8x32xf32>
    %86 = tpu.matmul %84, %85, %cst_49 {dimension_numbers = #tpu.dot_dimension_numbers<[1], [0], [0], [1], [0, 0, 1, 1], [], []>} : vector<8x64xbf16>, vector<64x32xbf16>, vector<8x32xf32> -> vector<8x32xf32>
    %c0_50 = arith.constant 0 : index
    %c0_51 = arith.constant 0 : index
    %87 = vector.load %arg18[%c0_50, %c0_51] : memref<1x32xf32, #tpu.memory_space<vmem>>, vector<1x32xf32>
    %88 = vector.broadcast %87 : vector<1x32xf32> to vector<8x32xf32>
    %89 = arith.addf %86, %88 : vector<8x32xf32>
    %90 = arith.addf %89, %64 : vector<8x32xf32>
    %c0_52 = arith.constant 0 : index
    %c0_53 = arith.constant 0 : index
    %91 = vector.load %arg19[%c0_52, %c0_53] : memref<1x32xf32, #tpu.memory_space<vmem>>, vector<1x32xf32>
    %c0_54 = arith.constant 0 : index
    %c0_55 = arith.constant 0 : index
    %92 = vector.load %arg20[%c0_54, %c0_55] : memref<1x32xf32, #tpu.memory_space<vmem>>, vector<1x32xf32>
    %cst_56 = arith.constant dense<0.000000e+00> : vector<8xf32>
    %93 = vector.multi_reduction <add>, %90, %cst_56 [1] : vector<8x32xf32> to vector<8xf32>
    %94 = vector.shape_cast %93 : vector<8xf32> to vector<8x1xf32>
    %cst_57 = arith.constant 3.200000e+01 : f32
    %95 = vector.broadcast %cst_57 : f32 to vector<8x1xf32>
    %96 = arith.divf %94, %95 : vector<8x1xf32>
    %97 = vector.broadcast %96 : vector<8x1xf32> to vector<8x32xf32>
    %98 = arith.subf %90, %97 : vector<8x32xf32>
    %99 = arith.mulf %98, %98 : vector<8x32xf32>
    %cst_58 = arith.constant dense<0.000000e+00> : vector<8xf32>
    %100 = vector.multi_reduction <add>, %99, %cst_58 [1] : vector<8x32xf32> to vector<8xf32>
    %101 = vector.shape_cast %100 : vector<8xf32> to vector<8x1xf32>
    %cst_59 = arith.constant 3.200000e+01 : f32
    %102 = vector.broadcast %cst_59 : f32 to vector<8x1xf32>
    %103 = arith.divf %101, %102 : vector<8x1xf32>
    %104 = vector.broadcast %96 : vector<8x1xf32> to vector<8x32xf32>
    %105 = arith.subf %90, %104 : vector<8x32xf32>
    %cst_60 = arith.constant 9.99999996E-13 : f32
    %106 = vector.broadcast %cst_60 : f32 to vector<8x1xf32>
    %107 = arith.addf %103, %106 : vector<8x1xf32>
    %108 = math.rsqrt %107 : vector<8x1xf32>
    %109 = vector.broadcast %108 : vector<8x1xf32> to vector<8x32xf32>
    %110 = arith.mulf %105, %109 : vector<8x32xf32>
    %111 = vector.broadcast %91 : vector<1x32xf32> to vector<8x32xf32>
    %112 = arith.mulf %110, %111 : vector<8x32xf32>
    %113 = vector.broadcast %92 : vector<1x32xf32> to vector<8x32xf32>
    %114 = arith.addf %112, %113 : vector<8x32xf32>
    %c0_61 = arith.constant 0 : index
    %c0_62 = arith.constant 0 : index
    %115 = vector.load %arg22[%c0_61, %c0_62] : memref<8x32xf32, #tpu.memory_space<vmem>>, vector<8x32xf32>
    tpu.vector_store %arg22[%c0_61, %c0_62], %114 {strides = array<i32>} : memref<8x32xf32, #tpu.memory_space<vmem>>, vector<8x32xf32>,
    %c0_63 = arith.constant 0 : index
    %c0_64 = arith.constant 0 : index
    %c0_65 = arith.constant 0 : index
    %c0_66 = arith.constant 0 : index
    %116 = vector.load %arg21[%c0_63, %c0_64, %c0_65, %c0_66] : memref<1x1x8x32xf32, #tpu.memory_space<vmem>>, vector<1x1x8x32xf32>
    %117 = vector.shape_cast %116 : vector<1x1x8x32xf32> to vector<8x32xf32>
    %118 = vector.shape_cast %114 : vector<8x32xf32> to vector<1x1x8x32xf32>
    tpu.vector_store %arg21[%c0_63, %c0_64, %c0_65, %c0_66], %118 {strides = array<i32>} : memref<1x1x8x32xf32, #tpu.memory_space<vmem>>, vector<1x1x8x32xf32>,
    return
  }
  func.func @transform_0(%arg0: i32, %arg1: i32) -> (i32, i32, i32) {
    %c0_i32 = arith.constant 0 : i32
    %c0_i32_0 = arith.constant 0 : i32
    %c0_i32_1 = arith.constant 0 : i32
    return %arg0, %c0_i32, %c0_i32_0 : i32, i32, i32
  }
  func.func @transform_1(%arg0: i32, %arg1: i32) -> (i32, i32, i32) {
    %c0_i32 = arith.constant 0 : i32
    %c0_i32_0 = arith.constant 0 : i32
    %c0_i32_1 = arith.constant 0 : i32
    return %arg0, %c0_i32, %c0_i32_0 : i32, i32, i32
  }
  func.func @transform_2(%arg0: i32, %arg1: i32) -> (i32, i32, i32) {
    %c0_i32 = arith.constant 0 : i32
    %c0_i32_0 = arith.constant 0 : i32
    %c0_i32_1 = arith.constant 0 : i32
    return %arg0, %c0_i32, %c0_i32_0 : i32, i32, i32
  }
  func.func @transform_3(%arg0: i32, %arg1: i32) -> (i32, i32, i32) {
    %c0_i32 = arith.constant 0 : i32
    %c0_i32_0 = arith.constant 0 : i32
    %c0_i32_1 = arith.constant 0 : i32
    %c0_i32_2 = arith.constant 0 : i32
    return %c0_i32, %c0_i32_0, %c0_i32_1 : i32, i32, i32
  }
  func.func @transform_4(%arg0: i32, %arg1: i32) -> (i32, i32, i32) {
    %c0_i32 = arith.constant 0 : i32
    %c0_i32_0 = arith.constant 0 : i32
    %c0_i32_1 = arith.constant 0 : i32
    %c0_i32_2 = arith.constant 0 : i32
    return %c0_i32, %c0_i32_0, %c0_i32_1 : i32, i32, i32
  }
  func.func @transform_5(%arg0: i32, %arg1: i32) -> (i32, i32, i32) {
    %c0_i32 = arith.constant 0 : i32
    %c0_i32_0 = arith.constant 0 : i32
    %c0_i32_1 = arith.constant 0 : i32
    %c0_i32_2 = arith.constant 0 : i32
    return %c0_i32, %c0_i32_0, %c0_i32_1 : i32, i32, i32
  }
  func.func @transform_6(%arg0: i32, %arg1: i32) -> (i32, i32, i32) {
    %c0_i32 = arith.constant 0 : i32
    %c0_i32_0 = arith.constant 0 : i32
    %c0_i32_1 = arith.constant 0 : i32
    %c0_i32_2 = arith.constant 0 : i32
    return %c0_i32, %c0_i32_0, %c0_i32_1 : i32, i32, i32
  }
  func.func @transform_7(%arg0: i32, %arg1: i32) -> (i32, i32, i32) {
    %c0_i32 = arith.constant 0 : i32
    %c0_i32_0 = arith.constant 0 : i32
    %c0_i32_1 = arith.constant 0 : i32
    %c0_i32_2 = arith.constant 0 : i32
    return %c0_i32, %c0_i32_0, %c0_i32_1 : i32, i32, i32
  }
  func.func @transform_8(%arg0: i32, %arg1: i32) -> (i32, i32, i32) {
    %c0_i32 = arith.constant 0 : i32
    %c0_i32_0 = arith.constant 0 : i32
    %c0_i32_1 = arith.constant 0 : i32
    %c0_i32_2 = arith.constant 0 : i32
    return %c0_i32, %c0_i32_0, %c0_i32_1 : i32, i32, i32
  }
  func.func @transform_9(%arg0: i32, %arg1: i32) -> (i32, i32, i32) {
    %c0_i32 = arith.constant 0 : i32
    %c0_i32_0 = arith.constant 0 : i32
    %c0_i32_1 = arith.constant 0 : i32
    %c0_i32_2 = arith.constant 0 : i32
    return %c0_i32, %c0_i32_0, %c0_i32_1 : i32, i32, i32
  }
  func.func @transform_10(%arg0: i32, %arg1: i32) -> (i32, i32) {
    %c0_i32 = arith.constant 0 : i32
    %c0_i32_0 = arith.constant 0 : i32
    %c0_i32_1 = arith.constant 0 : i32
    return %c0_i32, %c0_i32_0 : i32, i32
  }
  func.func @transform_11(%arg0: i32, %arg1: i32) -> (i32, i32) {
    %c0_i32 = arith.constant 0 : i32
    %c0_i32_0 = arith.constant 0 : i32
    %c0_i32_1 = arith.constant 0 : i32
    return %c0_i32, %c0_i32_0 : i32, i32
  }
  func.func @transform_12(%arg0: i32, %arg1: i32) -> (i32, i32) {
    %c0_i32 = arith.constant 0 : i32
    %c0_i32_0 = arith.constant 0 : i32
    %c0_i32_1 = arith.constant 0 : i32
    return %c0_i32, %c0_i32_0 : i32, i32
  }
  func.func @transform_13(%arg0: i32, %arg1: i32) -> (i32, i32) {
    %c0_i32 = arith.constant 0 : i32
    %c0_i32_0 = arith.constant 0 : i32
    %c0_i32_1 = arith.constant 0 : i32
    return %c0_i32, %c0_i32_0 : i32, i32
  }
  func.func @transform_14(%arg0: i32, %arg1: i32) -> (i32, i32) {
    %c0_i32 = arith.constant 0 : i32
    %c0_i32_0 = arith.constant 0 : i32
    %c0_i32_1 = arith.constant 0 : i32
    return %c0_i32, %c0_i32_0 : i32, i32
  }
  func.func @transform_15(%arg0: i32, %arg1: i32) -> (i32, i32) {
    %c0_i32 = arith.constant 0 : i32
    %c0_i32_0 = arith.constant 0 : i32
    %c0_i32_1 = arith.constant 0 : i32
    return %c0_i32, %c0_i32_0 : i32, i32
  }
  func.func @transform_16(%arg0: i32, %arg1: i32) -> (i32, i32) {
    %c0_i32 = arith.constant 0 : i32
    %c0_i32_0 = arith.constant 0 : i32
    %c0_i32_1 = arith.constant 0 : i32
    return %c0_i32, %c0_i32_0 : i32, i32
  }
  func.func @transform_17(%arg0: i32, %arg1: i32) -> (i32, i32) {
    %c0_i32 = arith.constant 0 : i32
    %c0_i32_0 = arith.constant 0 : i32
    %c0_i32_1 = arith.constant 0 : i32
    return %c0_i32, %c0_i32_0 : i32, i32
  }
  func.func @transform_18(%arg0: i32, %arg1: i32) -> (i32, i32) {
    %c0_i32 = arith.constant 0 : i32
    %c0_i32_0 = arith.constant 0 : i32
    %c0_i32_1 = arith.constant 0 : i32
    return %c0_i32, %c0_i32_0 : i32, i32
  }
  func.func @transform_19(%arg0: i32, %arg1: i32) -> (i32, i32, i32, i32) {
    %c0_i32 = arith.constant 0 : i32
    %c0_i32_0 = arith.constant 0 : i32
    %c0_i32_1 = arith.constant 0 : i32
    return %arg1, %arg0, %c0_i32, %c0_i32_0 : i32, i32, i32, i32
  }
}

</mosaic_0001>

<bundles_post_ra>
// kernel: tpu_custom_call.1
= control target key start
LH: loop header
LB: loop body
LE: loop exit
PB: predicated region body
PF: predicated region fallthrough
CT: control target
= control target key end

     0   :  { %s3573_s0 = inlined_call_operand.vmem [shape: f32[2,8,32], index: 0, kind: input, shape index: {}]   ;;  %s3574_s1 = inlined_call_operand.vmem [shape: f32[2,8,32], index: 1, kind: input, shape index: {}]   ;;  %s3575_s2 = inlined_call_operand.vmem [shape: f32[2,1,8], index: 2, kind: input, shape index: {}]   ;;  %s3576_s3 = inlined_call_operand.vmem [shape: bf16[4,32,8], index: 3, kind: input, shape index: {}]   ;;  %s3577_s4 = inlined_call_operand.vmem [shape: f32[4,1,8], index: 4, kind: input, shape index: {}]   ;;  %s3578_s5 = inlined_call_operand.vmem [shape: bf16[4,32,8], index: 5, kind: input, shape index: {}]   ;;  %s3579_s6 = inlined_call_operand.vmem [shape: f32[4,1,8], index: 6, kind: input, shape index: {}]   ;;  %s3580_s7 = inlined_call_operand.vmem [shape: bf16[4,32,8], index: 7, kind: input, shape index: {}]   ;;  %s3581_s8 = inlined_call_operand.vmem [shape: f32[4,1,8], index: 8, kind: input, shape index: {}]   ;;  %s3582_s9 = inlined_call_operand.vmem [shape: bf16[4,8,32], index: 9, kind: input, shape index: {}]   ;;  %s3583_s10 = inlined_call_operand.vmem [shape: f32[1,32], index: 10, kind: input, shape index: {}]   ;;  %s3584_s11 = inlined_call_operand.vmem [shape: f32[1,32], index: 11, kind: input, shape index: {}]   ;;  %s3585_s12 = inlined_call_operand.vmem [shape: f32[1,32], index: 12, kind: input, shape index: {}]   ;;  %s3586_s13 = inlined_call_operand.vmem [shape: bf16[32,64], index: 13, kind: input, shape index: {}]   ;;  %s3587_s14 = inlined_call_operand.vmem [shape: f32[1,64], index: 14, kind: input, shape index: {}]   ;;  %s3588_s15 = inlined_call_operand.vmem [shape: bf16[64,32], index: 15, kind: input, shape index: {}]   ;;  %s3589_s16 = inlined_call_operand.vmem [shape: f32[1,32], index: 16, kind: input, shape index: {}]   ;;  %s3590_s17 = inlined_call_operand.vmem [shape: f32[1,32], index: 17, kind: input, shape index: {}]   ;;  %s3591_s18 = inlined_call_operand.vmem [shape: f32[1,32], index: 18, kind: input, shape index: {}]   ;;  %s3592_s19 = inlined_call_operand.hbm [shape: f32[2,2,8,32], index: 19, kind: output, shape index: {}]  }
   0x1   :  { %3610 = sst [smem:[#allocation20_spill]] %s3573_s0 }
   0x2   :  { %3611 = sst [smem:[#allocation21_spill]] %s3574_s1 }
   0x3   :  { %3612 = sst [smem:[#allocation22_spill]] %s3575_s2 }
   0x4   :  { %3613 = sst [smem:[#allocation23_spill]] %s3576_s3 }
   0x5   :  { %3614 = sst [smem:[#allocation24_spill]] %s3589_s16 }
   0x6   :  { %3615 = sst [smem:[#allocation25_spill]] %s3590_s17 }
   0x7   :  { %3616 = sst [smem:[#allocation26_spill]] %s3591_s18 }
   0x8   :  { %3617 = sst [smem:[#allocation27_spill]] %s3592_s19 }
   0x9   :  { %24 = vsyncpa [#allocation6], 0 }
   0xa   :  { %26 = vsyncpa [#allocation6 + $0x1], 0  ;;  %s3089_s0 = smov 0   ;;  %s3091_s30 = smov 0  }
   0xb   :  { %s3093_s20 = smov 0   ;;  %s3095_s21 = smov 0  }
   0xc   :  { %s3097_s1 = smov 0   ;;  %s3099_s22 = smov 0  }
   0xd   :  { %s3101_s2 = smov 0   ;;  %s3103_s23 = smov 0  }
   0xe LB: > { %3618 = sst [smem:[#allocation8_spill]] %s2954_s0  ;;  %s2415_s24 = sadd.s32 4294967295, %s2982_s23   ;;  %s2982_s23 = sphi %s3103_s23, %s32_s23   ;;  %s2978_s2 = sphi %s3101_s2, %s3656_s2   ;;  %s2974_s22 = sphi %s3099_s22, %s3655_s22   ;;  %s2970_s1 = sphi %s3097_s1, %s3654_s1   ;;  %s2966_s21 = sphi %s3095_s21, %s3653_s21   ;;  %s2962_s20 = sphi %s3093_s20, %s3652_s20   ;;  %s2958_s30 = sphi %s3091_s30, %s3651_s30   ;;  %s2954_s0 = sphi %s3089_s0, %s3650_s0  }
   0xf   : > { %3619 = sst [smem:[#allocation9_spill]] %s2958_s30  ;;  %s2416_s25 = sadd.s32 4294967294, %s2982_s23  }
  0x10   : > { %3620 = sst [smem:[#allocation10_spill]] %s2962_s20  ;;  %s41_s3 = sadd.s32 1, %s2974_s22 }
  0x11   : > { %3621 = sst [smem:[#allocation11_spill]] %s2970_s1  ;;  %p42_p0 = scmp.ge.s32.totalorder %s41_s3, 2 }
  0x12   : > { %3622 = sst [smem:[#allocation12_spill]] %s2974_s22  ;;  %s44_s26 = sadd.s32 1, %s2978_s2 }
  0x13   : > { %3623 = sst [smem:[#allocation13_spill]] %s2978_s2  ;;  %p477_p1 = scmp.ne.s32.totalorder %s2962_s20, %s2958_s30 }
  0x14   : > { %3624 = sst [smem:[#allocation14_spill]] %s2982_s23  ;;  %p478_p2 = scmp.eq.s32.totalorder %s2415_s24, 3 }
  0x15   : > { %s3658_s3 = smov (%p42_p0, %s41_s3), 0  ;;  %s3660_s26 = smov (!%p42_p0, %s44_s26), %s2978_s2 }
  0x16   : > { %3625 = sst [smem:[#allocation15_spill]] %s3658_s3  ;;  %s462_s27 = ssub.s32 %s2974_s22, %s3658_s3 }
  0x17   : > { %p3140_p3 = por %p478_p2, %p477_p1  ;;  %p46_p4 = scmp.ge.s32.totalorder %s3660_s26, 2 }
  0x18   : > { %p483_p5 = scmp.ne.s32.totalorder %s2958_s30, %s2954_s0  ;;  %p484_p6 = scmp.eq.s32.totalorder %s2416_s25, 3 }
  0x19   : > { %s3626_s28 = scalar_select %p3140_p3, 1, 0 }
  0x1a   : > { %p2419_p7 = scmp.ge.s32.totalorder %s2982_s23, 1  ;;  %s3662_s26 = smov (%p46_p4, %s3660_s26), 0 }
  0x1b   : > { %3627 = sst [smem:[#allocation16_spill]] %s3626_s28  ;;  %p3149_p8 = por %p484_p6, %p483_p5 }
  0x1c   : > { %3628 = sst [smem:[#allocation17_spill]] %s3662_s26  ;;  %p570_p9 = scmp.lt.s32.totalorder %s2982_s23, 5 }
  0x1d   : > { %s3629_s29 = scalar_select %p3149_p8, 1, 0 }
  0x1e   : > { %s463_s24 = ssub.s32 %s2978_s2, %s3662_s26  ;;  %s467_s19 = sadd.s32 1, %s2962_s20 }
  0x1f   : > { %3630 = sst [smem:[#allocation18_spill]] %s3629_s29  ;;  %s464_s18 = sor.u32 %s463_s24, %s462_s27 }
  0x20   : > { %p571_p10 = pnand %p2419_p7, %p570_p9  ;;  %p465_p11 = scmp.eq.s32.totalorder %s464_s18, 0 }
  0x21   : > { %s3607_s25 = sand.u32 (!%p571_p10), 1, %s2958_s30   ;;  %p632_p12 = scmp.lt.s32.totalorder (!%p571_p10), %s2970_s1, 1 }
  0x22   : > { %s3158_s3 = scalar_select %p465_p11, %s2962_s20, %s467_s19  }
  0x23   : > { %574 = sbr.rel (%p571_p10) target bundleno = 2600 (0xa28), region = 96  ;;  %s3164_s22 = sshll.u32 (!%p571_p10), %s3607_s25, 3 }
  0x24   : > { %3631 = sst [smem:[#allocation19_spill]] %s3158_s3  ;;  %s3632_s19 = sld [smem:[#allocation22_spill]] (!%p571_p10) }
  0x25   : > { %s3633_s20 = sld [smem:[#allocation20_spill]] (!%p571_p10)  ;;  %s3634_s28 = sld [smem:[#allocation21_spill]] (!%p571_p10) }
  0x26   : > { %s631_s25 = scalar_lea.vmem (!%p571_p10), [#allocation5], %s3164_s22  ;;  %p2423_p13 = scmp.ne.s32.totalorder (!%p571_p10), %s2966_s21, 0 }
  0x2a   : > { %s3167_s29 = scalar_select %p632_p12, %s2970_s1, 1 }
  0x2b   : > { %647 = sbr.rel (%p2423_p13) target bundleno = 294 (0x126), region = 100  ;;  %v2836_v0 = vld [vmem:[%s3578_s5] sm:$0xff] (!%p2423_p13)   ;;  %v2984_v1 = vmov (!%p2423_p13), 0.0   ;;  %v2837_v2 = vld [vmem:[%s3578_s5 + $0x10] sm:$0xff] (!%p2423_p13)   ;;  %v2838_v3 = vld [vmem:[%s3578_s5 + $0x8] sm:$0xff] (!%p2423_p13)   ;;  %vm2985_vm0 = vmmov (!%p2423_p13), 0  }
  0x2c   : > { %s2421_s27 = sshll.u32 %s3167_s29, 3  ;;  %s642_s26 = scalar_lea.vmem %s3632_s19, %s3167_s29  ;;  %2573 = vmatprep.subr.bf16.mxu0 (!%p2423_p13), %v2984_v1  ;;  %2581 = vmatprep.subr.bf16.mxu1 (!%p2423_p13), %v2984_v1  ;;  %v2839_v4 = vld [vmem:[%s3578_s5 + $0x18] sm:$0xff] (!%p2423_p13)   ;;  %vm649_vm1 = vcmask (!%p2423_p13), 261120   ;;  %v2840_v8 = vld [vmem:[%s3578_s5 + $0x20] sm:$0xff] (!%p2423_p13)   ;;  %v2841_v9 = vld [vmem:[%s3578_s5 + $0x30] sm:$0xff] (!%p2423_p13)   ;;  %vm1164_vm2 = vcmask (!%p2423_p13), 60416  }
  0x2d   : > { %s635_s0 = scalar_lea.vmem %s3633_s20, %s2421_s27  ;;  %s639_s30 = scalar_lea.vmem %s3634_s28, %s2421_s27  ;;  %2574 = vmatpush3.bf16.msra.mxu0 (!%p2423_p13), %v2836_v0  ;;  %2577 = vmatprep.mubr.msk.bf16.mxu0 (!%p2423_p13), %vm2985_vm0, %v2984_v1  ;;  %v2842_v10 = vld [vmem:[%s3578_s5 + $0x28] sm:$0xff] (!%p2423_p13)   ;;  %v2843_v11 = vld [vmem:[%s3578_s5 + $0x38] sm:$0xff] (!%p2423_p13)   ;;  %v2844_v12 = vld [vmem:[%s3580_s7] sm:$0xff] (!%p2423_p13)  }
  0x2e   : > { %2582 = vmatpush3.bf16.msra.mxu1 (!%p2423_p13), %v2837_v2  ;;  %2575 = vmatprep.subr.bf16.mxu0 (!%p2423_p13), %v2984_v1  ;;  %v648_v5 = vld [vmem:[%s635_s0] sm:$0xff] (!%p2423_p13)  ;;  %v2845_v13 = vld [vmem:[%s3580_s7 + $0x10] sm:$0xff] (!%p2423_p13)   ;;  %v2846_v14 = vld [vmem:[%s3580_s7 + $0x8] sm:$0xff] (!%p2423_p13)  }
  0x2f   : > { %2583 = vmatprep.subr.bf16.mxu1 (!%p2423_p13), %v2984_v1  ;;  %2585 = vmatprep.mubr.msk.bf16.mxu1 (!%p2423_p13), %vm2985_vm0, %v2984_v1  ;;  %v651_v6 = vld [vmem:[%s639_s30] sm:$0xff] (!%p2423_p13)  ;;  %650 = vst.msk [vmem:[#allocation2] sm:$0xff] (!%p2423_p13), %vm649_vm1, %v648_v5  ;;  %v2847_v15 = vld [vmem:[%s3580_s7 + $0x18] sm:$0xff] (!%p2423_p13)   ;;  %v2849_v17 = vld [vmem:[%s3580_s7 + $0x30] sm:$0xff] (!%p2423_p13)  }
  0x30   : > { %v652_v7 = vpack.c.bf16 (!%p2423_p13), %v651_v6, %v651_v6  ;;  %v2848_v16 = vld [vmem:[%s3580_s7 + $0x20] sm:$0xff] (!%p2423_p13)   ;;  %v2850_v18 = vld [vmem:[%s3580_s7 + $0x28] sm:$0xff] (!%p2423_p13)   ;;  %v2851_v19 = vld [vmem:[%s3580_s7 + $0x38] sm:$0xff] (!%p2423_p13)  }
  0x31   : > { %2576 = vmatpush3.bf16.msra.mxu0 (!%p2423_p13), %v2838_v3  ;;  %v2424_v20 = vld [vmem:[%s3579_s6] ss:$0 sm:$0xff] (!%p2423_p13)  ;;  %v2425_v21 = vld [vmem:[%s3579_s6 + $0x1] ss:$0 sm:$0xff] (!%p2423_p13)  ;;  %v2426_v34 = vld [vmem:[%s3579_s6 + $0x2] ss:$0 sm:$0xff] (!%p2423_p13) }
  0x32   : > { %2584 = vmatpush3.bf16.msra.mxu1 %v2839_v4  ;;  %2589 = vmatprep.subr.bf16.mxu0 %v2984_v1  ;;  %v2427_v35 = vld [vmem:[%s3579_s6 + $0x3] ss:$0 sm:$0xff]  ;;  %v2440_v48 = vld [vmem:[%s3581_s8] ss:$0 sm:$0xff]  ;;  %v2441_v49 = vld [vmem:[%s3581_s8 + $0x1] ss:$0 sm:$0xff] }
  0x33   : > { %2597 = vmatprep.subr.bf16.mxu1 %v2984_v1  ;;  %v2442_v62 = vld [vmem:[%s3581_s8 + $0x2] ss:$0 sm:$0xff]  ;;  %v2443_v63 = vld [vmem:[%s3581_s8 + $0x3] ss:$0 sm:$0xff] }
  0x34   : > { %2578 = vmatmul.mubr.msk.bf16.vlgmr.msra.gmra.mrb[0].mxu0 %vm649_vm1, %v652_v7 }
  0x35   : > { %2586 = vmatmul.mubr.msk.bf16.vlgmr.msra.gmra.mrb[0].mxu1 %vm649_vm1, %v652_v7  ;;  %2590 = vmatpush3.bf16.msra.mxu0 %v2840_v8 }
  0x36   : > { %2598 = vmatpush3.bf16.msra.mxu1 %v2841_v9  ;;  %2591 = vmatprep.subr.bf16.mxu0 %v2984_v1 }
  0x37   : > { %2599 = vmatprep.subr.bf16.mxu1 %v2984_v1  ;;  %2593 = vmatprep.mubr.msk.bf16.mxu0 %vm2985_vm0, %v2984_v1 }
  0x38   : > { %2601 = vmatprep.mubr.msk.bf16.mxu1 %vm2985_vm0, %v2984_v1 }
  0x39   : > { %2592 = vmatpush3.bf16.msra.mxu0 %v2842_v10 }
  0x3a   : > { %2600 = vmatpush3.bf16.msra.mxu1 %v2843_v11  ;;  %2605 = vmatprep.subr.bf16.mxu0 %v2984_v1 }
  0x3b   : > { %2613 = vmatprep.subr.bf16.mxu1 %v2984_v1 }
  0x3c   : > { %2594 = vmatmul.mubr.msk.bf16.vlgmr.msra.gmra.mrb[4].mxu0 %vm649_vm1, %v652_v7 }
  0x3d   : > { %2602 = vmatmul.mubr.msk.bf16.vlgmr.msra.gmra.mrb[4].mxu1 %vm649_vm1, %v652_v7  ;;  %2606 = vmatpush3.bf16.msra.mxu0 %v2844_v12 }
  0x3e   : > { %2614 = vmatpush3.bf16.msra.mxu1 %v2845_v13  ;;  %2607 = vmatprep.subr.bf16.mxu0 %v2984_v1 }
  0x3f   : > { %2615 = vmatprep.subr.bf16.mxu1 %v2984_v1  ;;  %2609 = vmatprep.mubr.msk.bf16.mxu0 %vm2985_vm0, %v2984_v1 }
  0x40   : > { %2617 = vmatprep.mubr.msk.bf16.mxu1 %vm2985_vm0, %v2984_v1 }
  0x41   : > { %2608 = vmatpush3.bf16.msra.mxu0 %v2846_v14 }
  0x42   : > { %2616 = vmatpush3.bf16.msra.mxu1 %v2847_v15  ;;  %2621 = vmatprep.subr.bf16.mxu0 %v2984_v1 }
  0x43   : > { %2629 = vmatprep.subr.bf16.mxu1 %v2984_v1 }
  0x44   : > { %2610 = vmatmul.mubr.msk.bf16.vlgmr.msra.gmra.mrb[8].mxu0 %vm649_vm1, %v652_v7 }
  0x45   : > { %2618 = vmatmul.mubr.msk.bf16.vlgmr.msra.gmra.mrb[8].mxu1 %vm649_vm1, %v652_v7  ;;  %2622 = vmatpush3.bf16.msra.mxu0 %v2848_v16 }
  0x46   : > { %2630 = vmatpush3.bf16.msra.mxu1 %v2849_v17  ;;  %2623 = vmatprep.subr.bf16.mxu0 %v2984_v1 }
  0x47   : > { %2631 = vmatprep.subr.bf16.mxu1 %v2984_v1  ;;  %2625 = vmatprep.mubr.msk.bf16.mxu0 %vm2985_vm0, %v2984_v1 }
  0x48   : > { %2633 = vmatprep.mubr.msk.bf16.mxu1 %vm2985_vm0, %v2984_v1 }
  0x49   : > { %2624 = vmatpush3.bf16.msra.mxu0 %v2850_v18 }
  0x4a   : > { %2632 = vmatpush3.bf16.msra.mxu1 %v2851_v19 }
  0x4c   : > { %2626 = vmatmul.mubr.msk.bf16.vlgmr.msra.gmra.mrb[12].mxu0 %vm649_vm1, %v652_v7 }
  0x4d   : > { %2634 = vmatmul.mubr.msk.bf16.vlgmr.msra.gmra.mrb[12].mxu1 %vm649_vm1, %v652_v7 }
 0x107   : > { %v746_v22 = vpop.f32.mrb[0].mxu0 }
 0x108   : > { %v747_v23 = vadd.f32 %v2424_v20, %v746_v22  ;;  %v798_v24 = vpop.f32.mrb[0].mxu1  ;;  %v2579_v25 = vpop.f32.mrb[1].mxu0 }
 0x109   : > { %v799_v26 = vadd.f32 %v2425_v21, %v798_v24  ;;  %v2587_v27 = vpop.f32.mrb[1].mxu1  ;;  %v749_v28 = vpop.f32.mrb[2].mxu0 }
 0x10a   : > { %v1160_v29 = vpack.c.bf16 %v747_v23, %v747_v23  ;;  %v801_v30 = vpop.f32.mrb[2].mxu1  ;;  %v2580_v31 = vpop.f32.mrb[3].mxu0 }
 0x10b   : > { %v1161_v32 = vpack.c.bf16 %v799_v26, %v799_v26  ;;  %v2588_v33 = vpop.f32.mrb[3].mxu1 }
 0x10c   : > { %1165 = vst.msk [vmem:[#allocation3] sm:$0xf] %vm1164_vm2, %v1160_v29 }
 0x10d   : > { %1166 = vst.msk [vmem:[#allocation3 + $0x4] sm:$0xf] %vm1164_vm2, %v1161_v32 }
 0x10f   : > { %v850_v36 = vpop.f32.mrb[4].mxu0 }
 0x110   : > { %v851_v37 = vadd.f32 %v2426_v34, %v850_v36  ;;  %v902_v38 = vpop.f32.mrb[4].mxu1  ;;  %v2595_v39 = vpop.f32.mrb[5].mxu0 }
 0x111   : > { %v903_v40 = vadd.f32 %v2427_v35, %v902_v38  ;;  %v2603_v41 = vpop.f32.mrb[5].mxu1  ;;  %v853_v42 = vpop.f32.mrb[6].mxu0 }
 0x112   : > { %v1162_v43 = vpack.c.bf16 %v851_v37, %v851_v37  ;;  %v905_v44 = vpop.f32.mrb[6].mxu1  ;;  %v2596_v45 = vpop.f32.mrb[7].mxu0 }
 0x113   : > { %v1163_v46 = vpack.c.bf16 %v903_v40, %v903_v40  ;;  %v2604_v47 = vpop.f32.mrb[7].mxu1 }
 0x114   : > { %1167 = vst.msk [vmem:[#allocation3 + $0x8] sm:$0xf] %vm1164_vm2, %v1162_v43 }
 0x115   : > { %1168 = vst.msk [vmem:[#allocation3 + $0xc] sm:$0xf] %vm1164_vm2, %v1163_v46 }
 0x117   : > { %v998_v50 = vpop.f32.mrb[8].mxu0 }
 0x118   : > { %v999_v51 = vadd.f32 %v2440_v48, %v998_v50  ;;  %v1050_v52 = vpop.f32.mrb[8].mxu1  ;;  %v2611_v53 = vpop.f32.mrb[9].mxu0 }
 0x119   : > { %v1051_v54 = vadd.f32 %v2441_v49, %v1050_v52  ;;  %v2619_v55 = vpop.f32.mrb[9].mxu1  ;;  %v1001_v56 = vpop.f32.mrb[10].mxu0 }
 0x11a   : > { %v1169_v57 = vpack.c.bf16 %v999_v51, %v999_v51  ;;  %v1053_v58 = vpop.f32.mrb[10].mxu1  ;;  %v2612_v59 = vpop.f32.mrb[11].mxu0 }
 0x11b   : > { %v1170_v60 = vpack.c.bf16 %v1051_v54, %v1051_v54  ;;  %v2620_v61 = vpop.f32.mrb[11].mxu1 }
 0x11c   : > { %1173 = vst.msk [vmem:[#allocation4] sm:$0xf] %vm1164_vm2, %v1169_v57 }
 0x11d   : > { %1174 = vst.msk [vmem:[#allocation4 + $0x4] sm:$0xf] %vm1164_vm2, %v1170_v60 }
 0x11f   : > { %v1102_v0 = vpop.f32.mrb[12].mxu0 }
 0x120   : > { %v1103_v1 = vadd.f32 %v2442_v62, %v1102_v0  ;;  %v1154_v2 = vpop.f32.mrb[12].mxu1  ;;  %v2627_v3 = vpop.f32.mrb[13].mxu0 }
 0x121   : > { %v1155_v4 = vadd.f32 %v2443_v63, %v1154_v2  ;;  %v2635_v5 = vpop.f32.mrb[13].mxu1  ;;  %v1105_v6 = vpop.f32.mrb[14].mxu0 }
 0x122   : > { %v1171_v7 = vpack.c.bf16 %v1103_v1, %v1103_v1  ;;  %v1157_v8 = vpop.f32.mrb[14].mxu1  ;;  %v2628_v9 = vpop.f32.mrb[15].mxu0 }
 0x123   : > { %v1172_v10 = vpack.c.bf16 %v1155_v4, %v1155_v4  ;;  %v2636_v11 = vpop.f32.mrb[15].mxu1 }
 0x124   : > { %1175 = vst.msk [vmem:[#allocation4 + $0x8] sm:$0xf] %vm1164_vm2, %v1171_v7 }
 0x125   : > { %1176 = vst.msk [vmem:[#allocation4 + $0xc] sm:$0xf] %vm1164_vm2, %v1172_v10 }
 0x126 PF: > { %s3635_s23 = sld [smem:[#allocation23_spill]]  ;;  %v2986_v13 = vmov 0.0   ;;  %vm2987_vm3 = vmmov 0   ;;  %vm1235_vm4 = vcmask 261120   ;;  %v1443_v23 = vld [vmem:[#allocation3] sm:$0xf] }
 0x127   : > { %2637 = vmatprep.subr.bf16.mxu0 %v2986_v13  ;;  %2645 = vmatprep.subr.bf16.mxu1 %v2986_v13  ;;  %vm1454_vm5 = vcmask 64512   ;;  %v1444_v25 = vld [vmem:[#allocation3 + $0x4] sm:$0xf]  ;;  %v2456_v27 = vld [vmem:[%s3577_s4] ss:$0 sm:$0xff]  ;;  %vm1694_vm6 = vcmask 1043456  }
 0x128   : > { %2641 = vmatprep.mubr.msk.bf16.mxu0 %vm2987_vm3, %v2986_v13  ;;  %2649 = vmatprep.mubr.msk.bf16.mxu1 %vm2987_vm3, %v2986_v13  ;;  %v1459_v24 = vsel %vm1454_vm5, %v1443_v23, 0  ;;  %v1505_v26 = vsel %vm1454_vm5, %v1444_v25, 0  ;;  %v2457_v28 = vld [vmem:[%s3577_s4 + $0x1] ss:$0 sm:$0xff]  ;;  %v1445_v36 = vld [vmem:[#allocation3 + $0x8] sm:$0xf] }
 0x129   : > { %v1446_v40 = vld [vmem:[#allocation3 + $0xc] sm:$0xf]  ;;  %v1551_v44 = vsel %vm1454_vm5, %v1445_v36, 0  ;;  %v2458_v46 = vld [vmem:[%s3577_s4 + $0x2] ss:$0 sm:$0xff]  ;;  %vm2230_vm7 = vcmask 523264  }
 0x12a   : > { %v3321_v17 = vld [vmem:[#allocation2] sm:$0xff]  ;;  %v1597_v47 = vsel %vm1454_vm5, %v1446_v40, 0  ;;  %s3639_s29 = sld [smem:[#allocation11_spill]]  ;;  %s2501_s28 = sshll.u32 %s2966_s21, 1 }
 0x12b   : > { %v1178_v18 = vpack.c.bf16 %v3321_v17, %v3321_v17  ;;  %v2459_v48 = vld [vmem:[%s3577_s4 + $0x3] ss:$0 sm:$0xff]  ;;  %v2472_v63 = vld [vmem:[%s642_s26] ss:$0 sm:$0xff]  ;;  %s3638_s26 = sld [smem:[#allocation24_spill]]  ;;  %s3642_s19 = sld [smem:[#allocation25_spill]] }
 0x12c   : > { %s3636_s3 = smov %s3635_s23  ;;  %v2852_v12 = vld [vmem:[%s3635_s23] sm:$0xff]   ;;  %s3640_s23 = sld [smem:[#allocation9_spill]] }
 0x12d   : > { %v2853_v14 = vld [vmem:[%s3636_s3 + $0x10] sm:$0xff]   ;;  %2638 = vmatpush3.bf16.msra.mxu0 %v2852_v12  ;;  %v2854_v15 = vld [vmem:[%s3636_s3 + $0x8] sm:$0xff]   ;;  %v2855_v16 = vld [vmem:[%s3636_s3 + $0x18] sm:$0xff]   ;;  %s3643_s17 = sld [smem:[#allocation26_spill]]  ;;  %s2322_s16 = sshll.u32 %s631_s25, 4  ;;  %s3516_s16 = int_to_ptr.vmem [resolvable:$true] %s2322_s16 }
 0x12e   : > { %2646 = vmatpush3.bf16.msra.mxu1 %v2853_v14  ;;  %2639 = vmatprep.subr.bf16.mxu0 %v2986_v13  ;;  %v2856_v19 = vld [vmem:[%s3636_s3 + $0x20] sm:$0xff]   ;;  %v2857_v20 = vld [vmem:[%s3636_s3 + $0x30] sm:$0xff]   ;;  %v2858_v21 = vld [vmem:[%s3636_s3 + $0x28] sm:$0xff]   ;;  %s3644_s21 = sld [smem:[#allocation27_spill]]  ;;  %s2888_s30 = scalar_lea.vmem %s3516_s16, 128 }
 0x12f   : > { %2647 = vmatprep.subr.bf16.mxu1 %v2986_v13  ;;  %v2859_v22 = vld [vmem:[%s3636_s3 + $0x38] sm:$0xff]   ;;  %p2889_p0 = scmp.ne.s32.totalorder %s3516_s16, %s2888_s30  ;;  %s2988_s18 = smov [#allocation5]  }
 0x130   : > { %s2318_s27 = sadd.s32 %s3639_s29, %s2501_s28 }
 0x131   : > { %2640 = vmatpush3.bf16.msra.mxu0 %v2854_v15  ;;  %s2502_s20 = sshll.u32 %s2318_s27, 7  ;;  %p2890_p1 = pnand %p2889_p0, %p3140_p3 }
 0x132   : > { %2648 = vmatpush3.bf16.msra.mxu1 %v2855_v16  ;;  %2653 = vmatprep.subr.bf16.mxu0 %v2986_v13  ;;  %s3646_s28 = sand.u32 1, %s3640_s23  }
 0x133   : > { %2661 = vmatprep.subr.bf16.mxu1 %v2986_v13  ;;  %s2307_s27 = scalar_lea.sflag [#allocation6], %s3646_s28  ;;  %p2891_p2 = pneg %p2890_p1 }
 0x134   : > { %2642 = vmatmul.mubr.msk.bf16.vlgmr.msra.gmra.mrb[0].mxu0 %vm1235_vm4, %v1178_v18  ;;  %s3645_s3 = smov %s3644_s21  ;;  %s3514_s29 = scalar_lea.hbm %s3644_s21, %s2502_s20 }
 0x135   : > { %2654 = vmatpush3.bf16.msra.mxu0 %v2856_v19  ;;  %2650 = vmatmul.mubr.msk.bf16.vlgmr.msra.gmra.mrb[0].mxu1 %vm1235_vm4, %v1178_v18 }
 0x136   : > { %2662 = vmatpush3.bf16.msra.mxu1 %v2857_v20  ;;  %2655 = vmatprep.subr.bf16.mxu0 %v2986_v13 }
 0x137   : > { %2663 = vmatprep.subr.bf16.mxu1 %v2986_v13  ;;  %2657 = vmatprep.mubr.msk.bf16.mxu0 %vm2987_vm3, %v2986_v13 }
 0x138   : > { %2665 = vmatprep.mubr.msk.bf16.mxu1 %vm2987_vm3, %v2986_v13 }
 0x139   : > { %2656 = vmatpush3.bf16.msra.mxu0 %v2858_v21 }
 0x13a   : > { %2664 = vmatpush3.bf16.msra.mxu1 %v2859_v22  ;;  %2669 = vmatprep.subr.bf16.mxu0 %v2986_v13 }
 0x13b   : > { %2675 = vmatprep.subr.bf16.mxu1 %v2986_v13 }
 0x13c   : > { %2658 = vmatmul.mubr.msk.bf16.vlgmr.msra.gmra.mrb[4].mxu0 %vm1235_vm4, %v1178_v18 }
 0x13d   : > { %2666 = vmatmul.mubr.msk.bf16.vlgmr.msra.gmra.mrb[4].mxu1 %vm1235_vm4, %v1178_v18  ;;  %2671 = vmatprep.mubr.msk.bf16.mxu0 %vm2987_vm3, %v2986_v13 }
 0x13e   : > { %2677 = vmatprep.mubr.msk.bf16.mxu1 %vm2987_vm3, %v2986_v13 }
 0x142   : > { %2670 = vmatpush3.bf16.xpose.msra.mxu0 %v1459_v24 }
 0x143   : > { %2676 = vmatpush3.bf16.xpose.msra.mxu1 %v1505_v26  ;;  %2681 = vmatprep.subr.bf16.mxu0 %v2986_v13 }
 0x144   : > { %2687 = vmatprep.subr.bf16.mxu1 %v2986_v13 }
 0x207   : > { %v1273_v29 = vpop.f32.mrb[0].mxu0 }
 0x208   : > { %v1274_v30 = vadd.f32 %v2456_v27, %v1273_v29  ;;  %v2643_v31 = vpop.f32.mrb[1].mxu0  ;;  %v1325_v32 = vpop.f32.mrb[0].mxu1 }
 0x209   : > { %v1276_v33 = vpop.f32.mrb[2].mxu0  ;;  %v1326_v34 = vadd.f32 %v2457_v28, %v1325_v32  ;;  %v2651_v35 = vpop.f32.mrb[1].mxu1 }
 0x20a   : > { %v1435_v37 = vmul.f32 0.35355338, %v1274_v30  ;;  %v2644_v38 = vpop.f32.mrb[3].mxu0  ;;  %v1328_v39 = vpop.f32.mrb[2].mxu1 }
 0x20b   : > { %v1436_v41 = vmul.f32 0.35355338, %v1326_v34  ;;  %v2652_v42 = vpop.f32.mrb[3].mxu1 }
 0x20c   : > { %v1439_v43 = vpack.c.bf16 %v1435_v37, %v1435_v37 }
 0x20d   : > { %v1440_v45 = vpack.c.bf16 %v1436_v41, %v1436_v41 }
 0x20e   : > { %2672 = vmatmul.mubr.msk.bf16.vlgmr.msra.gmra.mrb[8].mxu0 %vm1454_vm5, %v1439_v43 }
 0x20f   : > { %v1377_v49 = vpop.f32.mrb[4].mxu0  ;;  %2682 = vmatpush3.bf16.xpose.msra.mxu0 %v1551_v44  ;;  %2678 = vmatmul.mubr.msk.bf16.vlgmr.msra.gmra.mrb[8].mxu1 %vm1454_vm5, %v1440_v45 }
 0x210   : > { %v1378_v50 = vadd.f32 %v2458_v46, %v1377_v49  ;;  %v2659_v51 = vpop.f32.mrb[5].mxu0  ;;  %v1429_v52 = vpop.f32.mrb[4].mxu1  ;;  %2688 = vmatpush3.bf16.xpose.msra.mxu1 %v1597_v47  ;;  %2683 = vmatprep.mubr.msk.bf16.mxu0 %vm2987_vm3, %v2986_v13  ;;  %v1687_v46 = vld [vmem:[#allocation4] sm:$0xf] }
 0x211   : > { %v1380_v53 = vpop.f32.mrb[6].mxu0  ;;  %v1430_v54 = vadd.f32 %v2459_v48, %v1429_v52  ;;  %v2667_v55 = vpop.f32.mrb[5].mxu1  ;;  %2689 = vmatprep.mubr.msk.bf16.mxu1 %vm2987_vm3, %v2986_v13  ;;  %2693 = vmatprep.subr.bf16.mxu0 %v2986_v13  ;;  %v1696_v47 = vsel %vm1694_vm6, %v1687_v46, 0  ;;  %v1688_v48 = vld [vmem:[#allocation4 + $0x4] sm:$0xf] }
 0x212   : > { %v1437_v56 = vmul.f32 0.35355338, %v1378_v50  ;;  %v2660_v57 = vpop.f32.mrb[7].mxu0  ;;  %v1432_v58 = vpop.f32.mrb[6].mxu1  ;;  %2699 = vmatprep.subr.bf16.mxu1 %v2986_v13  ;;  %v1742_v49 = vsel %vm1694_vm6, %v1688_v48, 0 }
 0x213   : > { %v1438_v59 = vmul.f32 0.35355338, %v1430_v54  ;;  %v2668_v60 = vpop.f32.mrb[7].mxu1  ;;  %v1689_v54 = vld [vmem:[#allocation4 + $0x8] sm:$0xf] }
 0x214   : > { %v1441_v61 = vpack.c.bf16 %v1437_v56, %v1437_v56  ;;  %v1788_v58 = vsel %vm1694_vm6, %v1689_v54, 0  ;;  %v1690_v60 = vld [vmem:[#allocation4 + $0xc] sm:$0xf] }
 0x215   : > { %v1442_v62 = vpack.c.bf16 %v1438_v59, %v1438_v59 }
 0x216   : > { %2684 = vmatmul.mubr.msk.bf16.vlgmr.msra.gmra.mrb[12].mxu0 %vm1454_vm5, %v1441_v61 }
 0x217   : > { %2690 = vmatmul.mubr.msk.bf16.vlgmr.msra.gmra.mrb[12].mxu1 %vm1454_vm5, %v1442_v62  ;;  %2695 = vmatprep.mubr.msk.bf16.mxu0 %vm2987_vm3, %v2986_v13 }
 0x218   : > { %2701 = vmatprep.mubr.msk.bf16.mxu1 %vm2987_vm3, %v2986_v13  ;;  %2694 = vmatpush3.bf16.msra.mxu0 %v1696_v47 }
 0x219   : > { %2705 = vmatprep.subr.bf16.mxu0 %v2986_v13  ;;  %2700 = vmatpush3.bf16.msra.mxu1 %v1742_v49 }
 0x21a   : > { %2711 = vmatprep.subr.bf16.mxu1 %v2986_v13 }
 0x2e1   : > { %v1495_v0 = vpop.f32.mrb[8].mxu0 }
 0x2e2   : > { %v1496_v1 = vadd.f32 %v2472_v63, %v1495_v0  ;;  %v2673_v2 = vpop.f32.mrb[9].mxu0  ;;  %v1541_v3 = vpop.f32.mrb[8].mxu1 }
 0x2e3   : > { %v1498_v4 = vpop.f32.mrb[10].mxu0  ;;  %v1542_v5 = vadd.f32 %v2472_v63, %v1541_v3  ;;  %v2679_v6 = vpop.f32.mrb[9].mxu1 }
 0x2e4   : > { %v2674_v7 = vpop.f32.mrb[11].mxu0  ;;  %v1544_v8 = vpop.f32.mrb[10].mxu1  ;;  %v1639_v9 = vsel %vm1454_vm5, %v1496_v1, -inf }
 0x2e5   : > { %1640 = vmax.xlane.f32.xlu0 %v1639_v9  ;;  %v2680_v10 = vpop.f32.mrb[11].mxu1  ;;  %v1642_v11 = vsel %vm1454_vm5, %v1542_v5, -inf  ;;  %v1881_v8 = vld [vmem:[%s3582_s9 + $0x4] sm:$0xf] }
 0x2e6   : > { %v1934_v9 = vsel %vm1694_vm6, %v1881_v8, 0  ;;  %v1882_v10 = vld [vmem:[%s3582_s9 + $0x8] sm:$0xf] }
 0x2e9   : > { %1643 = vmax.xlane.f32.xlu0 %v1642_v11  ;;  %v1587_v12 = vpop.f32.mrb[12].mxu0 }
 0x2ea   : > { %v1588_v14 = vadd.f32 %v2472_v63, %v1587_v12  ;;  %v2685_v15 = vpop.f32.mrb[13].mxu0  ;;  %v1633_v16 = vpop.f32.mrb[12].mxu1 }
 0x2eb   : > { %v1590_v18 = vpop.f32.mrb[14].mxu0  ;;  %v1634_v19 = vadd.f32 %v2472_v63, %v1633_v16  ;;  %v2691_v20 = vpop.f32.mrb[13].mxu1  ;;  %v1834_v63 = vsel %vm1694_vm6, %v1690_v60, 0  ;;  %v1980_v15 = vsel %vm1694_vm6, %v1882_v10, 0 }
 0x2ec   : > { %v2686_v21 = vpop.f32.mrb[15].mxu0  ;;  %v1636_v22 = vpop.f32.mrb[14].mxu1  ;;  %v1645_v23 = vsel %vm1454_vm5, %v1588_v14, -inf  ;;  %v1883_v18 = vld [vmem:[%s3582_s9 + $0xc] sm:$0xf] }
 0x2ed   : > { %1646 = vmax.xlane.f32.xlu1 %v1645_v23  ;;  %v2692_v24 = vpop.f32.mrb[15].mxu1  ;;  %v1648_v25 = vsel %vm1454_vm5, %v1634_v19, -inf  ;;  %v2026_v23 = vsel %vm1694_vm6, %v1883_v18, 0  ;;  %v2863_v18 = vld [vmem:[%s3588_s15 + $0x8] sm:$0xff]  }
 0x2f1   : > { %1649 = vmax.xlane.f32.xlu1 %v1648_v25 }
 0x372   : > { %v1641_v26 = vpop.xlane.xlu0 %1640 }
 0x373   : > { %v1651_v27 = vsub.f32 %v1496_v1, %v1641_v26  ;;  %v1880_v1 = vld [vmem:[%s3582_s9] sm:$0xf] }
 0x374   : > { %v1888_v4 = vsel %vm1694_vm6, %v1880_v1, 0 }
 0x375   : > { %v1655_v28 = vmul.f32 1.442695, %v1651_v27 }
 0x376   : > { %v1644_v29 = vpop.xlane.xlu0 %1643 }
 0x377   : > { %2866 = vpow2.f32 %v1655_v28  ;;  %v1652_v30 = vsub.f32 %v1542_v5, %v1644_v29 }
 0x379   : > { %v1657_v31 = vmul.f32 1.442695, %v1652_v30 }
 0x37a   : > { %v1647_v32 = vpop.xlane.xlu1 %1646 }
 0x37b   : > { %2868 = vpow2.f32 %v1657_v31  ;;  %v1653_v33 = vsub.f32 %v1588_v14, %v1647_v32 }
 0x37d   : > { %v1659_v34 = vmul.f32 1.442695, %v1653_v33 }
 0x37e   : > { %v1650_v35 = vpop.xlane.xlu1 %1649 }
 0x37f   : > { %2870 = vpow2.f32 %v1659_v34  ;;  %v1654_v36 = vsub.f32 %v1634_v19, %v1650_v35 }
 0x381   : > { %v2867_v37 = vpop.eup %2866  ;;  %v1661_v38 = vmul.f32 1.442695, %v1654_v36 }
 0x382   : > { %v1663_v39 = vsel %vm1454_vm5, %v2867_v37, 0.0 }
 0x383   : > { %2872 = vpow2.f32 %v1661_v38  ;;  %1664 = vadd.xlane.f32.xlu0 %v1663_v39 }
 0x385   : > { %v2869_v40 = vpop.eup %2868 }
 0x386   : > { %v1666_v41 = vsel %vm1454_vm5, %v2869_v40, 0.0 }
 0x387   : > { %1667 = vadd.xlane.f32.xlu1 %v1666_v41 }
 0x389   : > { %v2871_v42 = vpop.eup %2870 }
 0x38a   : > { %v1669_v43 = vsel %vm1454_vm5, %v2871_v42, 0.0 }
 0x38b   : > { %1670 = vadd.xlane.f32.xlu0 %v1669_v43 }
 0x38d   : > { %v2873_v44 = vpop.eup %2872 }
 0x38e   : > { %v1672_v45 = vsel %vm1454_vm5, %v2873_v44, 0.0 }
 0x38f   : > { %1673 = vadd.xlane.f32.xlu1 %v1672_v45 }
 0x410   : > { %v1665_v50 = vpop.xlane.xlu0 %1664 }
 0x411   : > { %2874 = vrcp.f32 %v1665_v50 }
 0x414   : > { %v1668_v51 = vpop.xlane.xlu1 %1667 }
 0x415   : > { %2876 = vrcp.f32 %v1668_v51 }
 0x418   : > { %v1671_v52 = vpop.xlane.xlu0 %1670 }
 0x419   : > { %2878 = vrcp.f32 %v1671_v52 }
 0x41b   : > { %v2875_v53 = vpop.eup %2874 }
 0x41c   : > { %v1679_v55 = vmul.f32 %v2875_v53, %v2867_v37  ;;  %v1674_v56 = vpop.xlane.xlu1 %1673 }
 0x41d   : > { %2880 = vrcp.f32 %v1674_v56 }
 0x41e   : > { %v1683_v57 = vpack.c.bf16 %v1679_v55, %v1679_v55  ;;  %v2485_v55 = vld [vmem:[%s3583_s10] ss:$0 sm:$0xff] }
 0x41f   : > { %v2877_v59 = vpop.eup %2876 }
 0x420   : > { %v1680_v61 = vmul.f32 %v2877_v59, %v2869_v40  ;;  %2696 = vmatmul.mubr.msk.bf16.vlgmr.msra.gmra.mrb[16].mxu0 %vm1454_vm5, %v1683_v57 }
 0x421   : > { %2706 = vmatpush3.bf16.msra.mxu0 %v1788_v58  ;;  %2707 = vmatprep.mubr.msk.bf16.mxu0 %vm2987_vm3, %v2986_v13 }
 0x422   : > { %v1684_v62 = vpack.c.bf16 %v1680_v61, %v1680_v61  ;;  %2717 = vmatprep.subr.bf16.mxu0 %v2986_v13 }
 0x423   : > { %v2879_v0 = vpop.eup %2878 }
 0x424   : > { %v1681_v2 = vmul.f32 %v2879_v0, %v2871_v42  ;;  %2702 = vmatmul.mubr.msk.bf16.vlgmr.msra.gmra.mrb[16].mxu1 %vm1454_vm5, %v1684_v62 }
 0x425   : > { %2712 = vmatpush3.bf16.msra.mxu1 %v1834_v63  ;;  %2713 = vmatprep.mubr.msk.bf16.mxu1 %vm2987_vm3, %v2986_v13 }
 0x426   : > { %v1685_v3 = vpack.c.bf16 %v1681_v2, %v1681_v2  ;;  %2723 = vmatprep.subr.bf16.mxu1 %v2986_v13 }
 0x427   : > { %v2881_v5 = vpop.eup %2880 }
 0x428   : > { %v1682_v6 = vmul.f32 %v2881_v5, %v2873_v44  ;;  %2708 = vmatmul.mubr.msk.bf16.vlgmr.msra.gmra.mrb[20].mxu0 %vm1454_vm5, %v1685_v3 }
 0x429   : > { %2718 = vmatpush3.bf16.msra.mxu0 %v1888_v4  ;;  %2719 = vmatprep.mubr.msk.bf16.mxu0 %vm2987_vm3, %v2986_v13  ;;  %v2860_v4 = vld [vmem:[%s3586_s13] sm:$0xff]  }
 0x42a   : > { %v1686_v7 = vpack.c.bf16 %v1682_v6, %v1682_v6  ;;  %2729 = vmatprep.subr.bf16.mxu0 %v2986_v13 }
 0x42c   : > { %2714 = vmatmul.mubr.msk.bf16.vlgmr.msra.gmra.mrb[20].mxu1 %vm1454_vm5, %v1686_v7 }
 0x42d   : > { %2725 = vmatprep.mubr.msk.bf16.mxu1 %vm2987_vm3, %v2986_v13  ;;  %2724 = vmatpush3.bf16.msra.mxu1 %v1934_v9  ;;  %v2486_v9 = vld [vmem:[%s3584_s11] ss:$0 sm:$0xff] }
 0x42e   : > { %2735 = vmatprep.subr.bf16.mxu1 %v2986_v13 }
 0x4f3   : > { %v1732_v11 = vpop.f32.mrb[16].mxu0 }
 0x4f4   : > { %v1876_v12 = vpack.c.bf16 %v1732_v11, %v1732_v11  ;;  %v2697_v14 = vpop.f32.mrb[17].mxu0  ;;  %v2487_v11 = vld [vmem:[%s3585_s12] ss:$0 sm:$0xff] }
 0x4f5   : > { %v1735_v16 = vpop.f32.mrb[18].mxu0 }
 0x4f6   : > { %v2698_v19 = vpop.f32.mrb[19].mxu0  ;;  %2720 = vmatmul.mubr.msk.bf16.vlgmr.msra.gmra.mrb[24].mxu0 %vm1454_vm5, %v1876_v12  ;;  %v2862_v16 = vld [vmem:[%s3588_s15] sm:$0xff]  }
 0x4f7   : > { %v1778_v20 = vpop.f32.mrb[16].mxu1  ;;  %2730 = vmatpush3.bf16.msra.mxu0 %v1980_v15  ;;  %2731 = vmatprep.mubr.msk.bf16.mxu0 %vm2987_vm3, %v2986_v13  ;;  %v2864_v19 = vld [vmem:[%s3588_s15 + $0x10] sm:$0xff]  }
 0x4f8   : > { %v1877_v21 = vpack.c.bf16 %v1778_v20, %v1778_v20  ;;  %v2703_v22 = vpop.f32.mrb[17].mxu1  ;;  %2741 = vmatprep.subr.bf16.mxu0 %v2986_v13  ;;  %v2865_v20 = vld [vmem:[%s3588_s15 + $0x18] sm:$0xff]  }
 0x4f9   : > { %v1781_v24 = vpop.f32.mrb[18].mxu1 }
 0x4fa   : > { %v2704_v25 = vpop.f32.mrb[19].mxu1  ;;  %2726 = vmatmul.mubr.msk.bf16.vlgmr.msra.gmra.mrb[24].mxu1 %vm1454_vm5, %v1877_v21  ;;  %v2488_v21 = vld [vmem:[%s3587_s14] ss:$0 sm:$0xff] }
 0x4fb   : > { %v1824_v26 = vpop.f32.mrb[20].mxu0  ;;  %2736 = vmatpush3.bf16.msra.mxu1 %v2026_v23  ;;  %2737 = vmatprep.mubr.msk.bf16.mxu1 %vm2987_vm3, %v2986_v13 }
 0x4fc   : > { %v1878_v27 = vpack.c.bf16 %v1824_v26, %v1824_v26  ;;  %v2709_v28 = vpop.f32.mrb[21].mxu0  ;;  %2749 = vmatprep.subr.bf16.mxu1 %v2986_v13 }
 0x4fd   : > { %v1827_v29 = vpop.f32.mrb[22].mxu0 }
 0x4fe   : > { %v2710_v30 = vpop.f32.mrb[23].mxu0  ;;  %2732 = vmatmul.mubr.msk.bf16.vlgmr.msra.gmra.mrb[28].mxu0 %vm1454_vm5, %v1878_v27 }
 0x4ff   : > { %v1870_v31 = vpop.f32.mrb[20].mxu1  ;;  %2745 = vmatprep.mubr.msk.bf16.mxu0 %vm2987_vm3, %v2986_v13  ;;  %2742 = vmatpush3.bf16.msra.mxu0 %v2860_v4 }
 0x500   : > { %v1879_v32 = vpack.c.bf16 %v1870_v31, %v1870_v31  ;;  %v2715_v33 = vpop.f32.mrb[21].mxu1  ;;  %2743 = vmatprep.subr.bf16.mxu0 %v2986_v13 }
 0x501   : > { %v1873_v34 = vpop.f32.mrb[22].mxu1 }
 0x502   : > { %v2716_v35 = vpop.f32.mrb[23].mxu1  ;;  %2738 = vmatmul.mubr.msk.bf16.vlgmr.msra.gmra.mrb[28].mxu1 %vm1454_vm5, %v1879_v32 }
 0x503   : > { %2757 = vmatprep.mubr.msk.bf16.mxu1 %vm2987_vm3, %v2986_v13  ;;  %2750 = vmatpush3.bf16.msra.mxu1 %v2862_v16 }
 0x504   : > { %2751 = vmatprep.subr.bf16.mxu1 %v2986_v13 }
 0x507   : > { %2752 = vmatpush3.bf16.msra.mxu1 %v2863_v18 }
 0x508   : > { %2753 = vmatprep.subr.bf16.mxu1 %v2986_v13 }
 0x50b   : > { %2754 = vmatpush3.bf16.msra.mxu1 %v2864_v19 }
 0x50c   : > { %2755 = vmatprep.subr.bf16.mxu1 %v2986_v13 }
 0x50f   : > { %2756 = vmatpush3.bf16.msra.mxu1 %v2865_v20 }
 0x5c9   : > { %v1924_v36 = vpop.f32.mrb[24].mxu0 }
 0x5ca   : > { %v2721_v37 = vpop.f32.mrb[25].mxu0  ;;  %v2068_v41 = vsel %vm1235_vm4, %v1924_v36, 0.0  ;;  %v2492_v36 = vld [vmem:[%s3638_s26] ss:$0 sm:$0xff] }
 0x5cb   : > { %v1927_v38 = vpop.f32.mrb[26].mxu0 }
 0x5cc   : > { %v2722_v39 = vpop.f32.mrb[27].mxu0 }
 0x5cd   : > { %v1970_v40 = vpop.f32.mrb[24].mxu1 }
 0x5ce   : > { %v2069_v42 = vsel %vm1235_vm4, %v1970_v40, 0.0  ;;  %v2727_v43 = vpop.f32.mrb[25].mxu1 }
 0x5cf   : > { %v2070_v44 = vadd.f32 %v2069_v42, %v2068_v41  ;;  %v1973_v45 = vpop.f32.mrb[26].mxu1 }
 0x5d0   : > { %v2728_v46 = vpop.f32.mrb[27].mxu1 }
 0x5d1   : > { %v2016_v47 = vpop.f32.mrb[28].mxu0 }
 0x5d2   : > { %v2071_v48 = vsel %vm1235_vm4, %v2016_v47, 0.0  ;;  %v2733_v49 = vpop.f32.mrb[29].mxu0 }
 0x5d3   : > { %v2072_v50 = vadd.f32 %v2071_v48, %v2070_v44  ;;  %v2019_v51 = vpop.f32.mrb[30].mxu0 }
 0x5d4   : > { %v2734_v52 = vpop.f32.mrb[31].mxu0 }
 0x5d5   : > { %v2062_v53 = vpop.f32.mrb[28].mxu1 }
 0x5d6   : > { %v2073_v54 = vsel %vm1235_vm4, %v2062_v53, 0.0  ;;  %v2739_v56 = vpop.f32.mrb[29].mxu1  ;;  %v2498_v53 = vld [vmem:[%s3642_s19] ss:$0 sm:$0xff]  ;;  %s2892_s19 = sshll.u32 %s2988_s18, 4  ;;  %s2893_s19 = int_to_ptr.vmem [resolvable:$false] %s2892_s19 }
 0x5d7   : > { %v2074_v57 = vadd.f32 %v2073_v54, %v2072_v50  ;;  %v2065_v58 = vpop.f32.mrb[30].mxu1  ;;  %s2894_s24 = scalar_lea.vmem %s2893_s19, 256  ;;  %p2895_p4 = scmp.lt.s32.totalorder %s3516_s16, %s2893_s19 }
 0x5d8   : > { %v2740_v59 = vpop.f32.mrb[31].mxu1  ;;  %p2896_p5 = scmp.lt.s32.totalorder %s2894_s24, %s2888_s30 }
 0x5d9   : > { %v2082_v60 = vadd.f32 %v2485_v55, %v2074_v57  ;;  %v2499_v55 = vld [vmem:[%s3643_s17] ss:$0 sm:$0xff] }
 0x5da   : > { %p2897_p6 = por %p2896_p5, %p2895_p4 }
 0x5db   : > { %v2083_v61 = vadd.f32 %v2082_v60, %v3321_v17  ;;  %v2861_v17 = vld [vmem:[%s3586_s13 + $0x8] sm:$0xff]  }
 0x5dc   : > { %2744 = vmatpush3.bf16.msra.mxu0 %v2861_v17  ;;  %p2898_p7 = pnand %p2897_p6, %p2891_p2 }
 0x5dd   : > { %v2086_v62 = vsel %vm1235_vm4, %v2083_v61, 0.0 }
 0x5de   : > { %2087 = vadd.xlane.f32.xlu0 %v2086_v62 }
 0x66b   : > { %v2088_v63 = vpop.xlane.xlu0 %2087 }
 0x66c   : > { %v2090_v0 = vmul.f32 0.03125, %v2088_v63 }
 0x66e   : > { %v2091_v1 = vsub.f32 %v2083_v61, %v2090_v0 }
 0x670   : > { %v2092_v2 = vmul.f32 %v2091_v1, %v2091_v1 }
 0x672   : > { %v2093_v3 = vsel %vm1235_vm4, %v2092_v2, 0.0 }
 0x673   : > { %2094 = vadd.xlane.f32.xlu1 %v2093_v3 }
 0x700   : > { %v2095_v5 = vpop.xlane.xlu1 %2094 }
 0x701   : > { %v2096_v6 = vmul.f32 0.03125, %v2095_v5 }
 0x703   : > { %v2097_v7 = vadd.f32 1e-12, %v2096_v6 }
 0x705   : > { %2882 = vrsqrt.f32 %v2097_v7 }
 0x70f   : > { %v2883_v8 = vpop.eup %2882 }
 0x710   : > { %v2099_v10 = vmul.f32 %v2883_v8, %v2091_v1 }
 0x712   : > { %v2106_v12 = vmul.f32 %v2486_v9, %v2099_v10 }
 0x714   : > { %v2113_v14 = vadd.f32 %v2487_v11, %v2106_v12 }
 0x716   : > { %v2114_v15 = vpack.c.bf16 %v2113_v14, %v2113_v14 }
 0x718   : > { %2746 = vmatmul.mubr.msk.bf16.vlgmr.msra.gmra.mrb[32].mxu0 %vm1235_vm4, %v2114_v15 }
 0x7eb   : > { %v2175_v22 = vpop.f32.mrb[32].mxu0 }
 0x7ec   : > { %v2176_v23 = vadd.f32 %v2488_v21, %v2175_v22  ;;  %v2747_v24 = vpop.f32.mrb[33].mxu0 }
 0x7ed   : > { %v2178_v25 = vpop.f32.mrb[34].mxu0 }
 0x7ee   : > { %v2182_v26 = vmul.f32 0.044715, %v2176_v23  ;;  %v2748_v27 = vpop.f32.mrb[35].mxu0  ;;  %v2181_v33 = vmul.f32 0.5, %v2176_v23 }
 0x7f0   : > { %v2183_v28 = vmul.f32 %v2182_v26, %v2176_v23 }
 0x7f2   : > { %v2184_v29 = vmul.f32 %v2183_v28, %v2176_v23 }
 0x7f4   : > { %v2185_v30 = vadd.f32 %v2184_v29, %v2176_v23 }
 0x7f6   : > { %v2186_v31 = vmul.f32 0.7978846, %v2185_v30 }
 0x7f8   : > { %2884 = vtanh.f32 %v2186_v31 }
 0x802   : > { %v2885_v32 = vpop.eup %2884 }
 0x803   : > { %v2188_v34 = vadd.f32 1.0, %v2885_v32 }
 0x805   : > { %v2189_v13 = vmul.f32 %v2188_v34, %v2181_v33 }
 0x807   : > { %v2190_v35 = vpack.c.bf16 %v2189_v13, %v2189_v13 }
 0x809   : > { %2758 = vmatmul.mubr.msk.bf16.vlgmr.msra.gmra.mrb[32].mxu1 %vm2230_vm7, %v2190_v35 }
 0x8dc   : > { %v2268_v37 = vpop.f32.mrb[32].mxu1 }
 0x8dd   : > { %v2269_v38 = vadd.f32 %v2492_v36, %v2268_v37  ;;  %v2759_v39 = vpop.f32.mrb[33].mxu1 }
 0x8de   : > { %v2271_v40 = vpop.f32.mrb[34].mxu1 }
 0x8df   : > { %v2760_v41 = vpop.f32.mrb[35].mxu1  ;;  %v2274_v42 = vadd.f32 %v2269_v38, %v2113_v14 }
 0x8e1   : > { %v2277_v43 = vsel %vm1235_vm4, %v2274_v42, 0.0 }
 0x8e2   : > { %2278 = vadd.xlane.f32.xlu0 %v2277_v43 }
 0x96f   : > { %v2279_v44 = vpop.xlane.xlu0 %2278 }
 0x970   : > { %v2280_v45 = vmul.f32 0.03125, %v2279_v44 }
 0x972   : > { %v2281_v46 = vsub.f32 %v2274_v42, %v2280_v45 }
 0x974   : > { %v2282_v47 = vmul.f32 %v2281_v46, %v2281_v46 }
 0x976   : > { %v2283_v48 = vsel %vm1235_vm4, %v2282_v47, 0.0 }
 0x977   : > { %2284 = vadd.xlane.f32.xlu1 %v2283_v48 }
 0xa04   : > { %v2285_v49 = vpop.xlane.xlu1 %2284 }
 0xa05   : > { %v2286_v50 = vmul.f32 0.03125, %v2285_v49 }
 0xa07   : > { %v2287_v51 = vadd.f32 1e-12, %v2286_v50 }
 0xa09   : > { %2886 = vrsqrt.f32 %v2287_v51 }
 0xa13   : > { %v2887_v52 = vpop.eup %2886 }
 0xa14   : > { %v2289_v54 = vmul.f32 %v2887_v52, %v2281_v46 }
 0xa16   : > { %v2296_v56 = vmul.f32 %v2498_v53, %v2289_v54 }
 0xa18   : > { %v2303_v57 = vadd.f32 %v2499_v55, %v2296_v56 }
 0xa1a   : > { %2304 = vst.msk [vmem:[#allocation2] sm:$0xff] %vm1235_vm4, %v2303_v57  ;;  %2305 = vst.msk [vmem:[%s631_s25] sm:$0xff] %vm1235_vm4, %v2303_v57 }
 0xa1b   : > { %2901 = shalt.err (!%p2898_p7)
}
 0xa1c   : > { %s2902_s22 = scalar_lea.hbm %s3514_s29, 128  ;;  %s2906_s2 = scalar_lea.hbm %s3645_s3, 512 }
 0xa1d   : > { %p2903_p9 = scmp.ne.s32.totalorder %s3514_s29, %s2902_s22  ;;  %p2907_p12 = scmp.lt.u32.totalorder %s3514_s29, %s3645_s3 }
 0xa1e   : > { %p2908_p13 = scmp.lt.u32.totalorder %s2906_s2, %s2902_s22  ;;  %p2910_p1 = scmp.lt.u32.totalorder %s2902_s22, %s3514_s29 }
 0xa1f   : > { %p2904_p10 = pnand %p2903_p9, %p3140_p3 }
 0xa20   : > { %p2909_p0 = por %p2908_p13, %p2907_p12 }
 0xa21   : > { %p2905_p11 = pneg %p2904_p10 }
 0xa22   : > { %p2911_p2 = por %p2910_p1, %p2909_p0 }
 0xa24   : > { %p2912_p4 = pnand %p2911_p2, %p2905_p11 }
 0xa26   : > { %2915 = shalt.err (!%p2912_p4)
}
 0xa27   : > { %2761 = dma.vmem_to_hbm [thread:$0]  (%p3140_p3), %s3516_s16, 128, %s3514_s29, %s2307_s27  }
 0xa28 PF: > { %s3647_s1 = sld [smem:[#allocation14_spill]]  ;;  %s3648_s26 = sld [smem:[#allocation8_spill]] }
 0xa2e   : > { %p2767_p5 = scmp.ge.s32.totalorder %s3647_s1, 2  ;;  %s2334_s28 = sand.u32 1, %s3648_s26  }
 0xa2f   : > { %s2335_s30 = scalar_lea.sflag [#allocation6], %s2334_s28 }
 0xa30   : > { %p2764_p6 = pnand %p2767_p5, %p3149_p8 }
 0xa32   : > { %2949 = dma.done.wait (!%p2764_p6), %s2335_s30, 128  }
 0xa33   : > { %2951 = vsyncadd (!%p2764_p6), %s2335_s30, 4294967168  ;;  %s32_s23 = sadd.s32 1, %s3647_s1   ;;  %s3650_s0 = sld [smem:[#allocation9_spill]] }
 0xa34   : > { %p29_p7 = scmp.ge.s32.totalorder %s32_s23, 6   ;;  %s3651_s30 = sld [smem:[#allocation10_spill]] }
 0xa35   : > { %s3652_s20 = sld [smem:[#allocation19_spill]]  ;;  %s3653_s21 = sld [smem:[#allocation12_spill]] }
 0xa36   : > { %s3654_s1 = sld [smem:[#allocation13_spill]]  ;;  %s3655_s22 = sld [smem:[#allocation15_spill]] }
 0xa37   : > { %s3656_s2 = sld [smem:[#allocation17_spill]]  ;;  %31 = sbr.rel (!%p29_p7) target bundleno = 14 (0xe), region = 141 }
 0xa3e   :  { %2340 = vsyncpa [#allocation6], 1 }
 0xa3f   :  { %2342 = vsyncpa [#allocation6 + $0x1], 1 }

</bundles_post_ra>
